<compile_context>
chip_gen: v5e
topology: v5e:2x2
jax: 0.10.0
libtpu: 0.0.40
codegen_flags: <defaults>
</compile_context>

<pallas_src>
import jax
import jax.numpy as jnp
from jax.experimental import pallas as pl
from jax.experimental.pallas import tpu as pltpu

_EPS = 1e-5
# Stay well under v7x's 64 MiB physical VMEM per TensorCore (v5e/v6e: 128 MiB).
_VMEM_LIMIT = 48 * 1024 * 1024


def _round_up(x, m):
    return (x + m - 1) // m * m


def _choose_tiles(M, K, N):
    """MXU-friendly tile sizes + padded problem dims (all multiples of tiles)."""
    tm = min(256, _round_up(M, 8))
    Mp = _round_up(M, tm)
    if N < 128:
        Np, tn = N, N                       # full-dim lane block (e.g. stem Cout=64)
    else:
        Np = _round_up(N, 128)
        tn = 256 if Np % 256 == 0 else 128
    if K < 128:
        Kp, tk = K, K                       # full-dim contraction block
    else:
        Kp = _round_up(K, 128)
        tk = 128
        for cand in (512, 384, 256, 128):
            if Kp % cand == 0:
                tk = cand
                break
    return tm, tn, tk, Mp, Np, Kp


def _pad2(x, rows, cols):
    r, c = x.shape
    if r == rows and c == cols:
        return x
    return jnp.pad(x, ((0, rows - r), (0, cols - c)))


# ---------------------------------------------------------------------------
# Pallas kernels
# ---------------------------------------------------------------------------
_MATMUL_CACHE = {}
_AFFINE_CACHE = {}
_POOL_CACHE = {}


def _build_matmul(Mp, Kp, Np, tm, tk, tn, emit_stats, add_bias, out_dtype):
    """Tiled bf16 matmul with f32 accumulator.

    Optionally emits per-M-tile partial BatchNorm statistics (sum and
    sum-of-squares over rows, finalized outside) and/or fuses a bias add.
    """

    def kernel(*refs):
        it = iter(refs)
        lhs_ref, w_ref = next(it), next(it)
        b_ref = next(it) if add_bias else None
        o_ref = next(it)
        stats_ref = next(it) if emit_stats else None
        acc_ref = next(it)

        @pl.when(pl.program_id(2) == 0)
        def _():
            acc_ref[...] = jnp.zeros_like(acc_ref)

        acc_ref[...] += jnp.dot(lhs_ref[...], w_ref[...],
                                preferred_element_type=jnp.float32)

        @pl.when(pl.program_id(2) == pl.num_programs(2) - 1)
        def _():
            acc = acc_ref[...]
            y = acc
            if add_bias:
                y = y + b_ref[...]
            o_ref[...] = y.astype(o_ref.dtype)
            if emit_stats:
                stats_ref[0, 0:1, :] = jnp.sum(acc, axis=0, keepdims=True)
                stats_ref[0, 1:2, :] = jnp.sum(acc * acc, axis=0, keepdims=True)

    in_specs = [
        pl.BlockSpec((tm, tk), lambda i, j, k: (i, k)),   # lhs tile
        pl.BlockSpec((tk, tn), lambda i, j, k: (k, j)),   # weight tile
    ]
    if add_bias:
        in_specs.append(pl.BlockSpec((1, tn), lambda i, j, k: (0, j)))

    y_spec = pl.BlockSpec((tm, tn), lambda i, j, k: (i, j))
    y_shape = jax.ShapeDtypeStruct((Mp, Np), out_dtype)
    if emit_stats:
        out_specs = (y_spec,
                     pl.BlockSpec((1, 2, tn), lambda i, j, k: (i, 0, j)))
        out_shape = (y_shape,
                     jax.ShapeDtypeStruct((Mp // tm, 2, Np), jnp.float32))
    else:
        out_specs = y_spec
        out_shape = y_shape

    return jax.jit(pl.pallas_call(
        kernel,
        grid=(Mp // tm, Np // tn, Kp // tk),
        in_specs=in_specs,
        out_specs=out_specs,
        out_shape=out_shape,
        scratch_shapes=[pltpu.VMEM((tm, tn), jnp.float32)],
        compiler_params=pltpu.CompilerParams(
            dimension_semantics=("parallel", "parallel", "arbitrary"),
            vmem_limit_bytes=_VMEM_LIMIT,
        ),
    ))


def _build_affine(Mp, Np, tm, tn, has_res, relu, out_dtype):
    """Tiled elementwise: y * scale + shift (+residual) (+ReLU)."""

    def kernel(*refs):
        if has_res:
            y_ref, s_ref, b_ref, r_ref, o_ref = refs
        else:
            y_ref, s_ref, b_ref, o_ref = refs
            r_ref = None
        out = y_ref[...].astype(jnp.float32) * s_ref[...] + b_ref[...]
        if has_res:
            out = out + r_ref[...].astype(jnp.float32)
        if relu:
            out = jnp.maximum(out, 0.0)
        o_ref[...] = out.astype(o_ref.dtype)

    in_specs = [
        pl.BlockSpec((tm, tn), lambda i, j: (i, j)),   # y tile
        pl.BlockSpec((1, tn), lambda i, j: (0, j)),    # scale
        pl.BlockSpec((1, tn), lambda i, j: (0, j)),    # shift
    ]
    if has_res:
        in_specs.append(pl.BlockSpec((tm, tn), lambda i, j: (i, j)))

    return jax.jit(pl.pallas_call(
        kernel,
        grid=(Mp // tm, Np // tn),
        in_specs=in_specs,
        out_specs=pl.BlockSpec((tm, tn), lambda i, j: (i, j)),
        out_shape=jax.ShapeDtypeStruct((Mp, Np), out_dtype),
        compiler_params=pltpu.CompilerParams(
            dimension_semantics=("parallel", "parallel"),
            vmem_limit_bytes=_VMEM_LIMIT,
        ),
    ))


def _build_maxpool(Mp, KK, C, tm, dtype):
    def kernel(x_ref, o_ref):
        o_ref[...] = jnp.max(x_ref[...], axis=1)

    return jax.jit(pl.pallas_call(
        kernel,
        grid=(Mp // tm,),
        in_specs=[pl.BlockSpec((tm, KK, C), lambda i: (i, 0, 0))],
        out_specs=pl.BlockSpec((tm, C), lambda i: (i, 0)),
        out_shape=jax.ShapeDtypeStruct((Mp, C), dtype),
        compiler_params=pltpu.CompilerParams(
            dimension_semantics=("parallel",),
            vmem_limit_bytes=_VMEM_LIMIT,
        ),
    ))


def _build_avgpool(N, HW, C):
    inv = 1.0 / HW

    def kernel(x_ref, o_ref):
        x = x_ref[...].astype(jnp.float32)
        o_ref[...] = jnp.sum(x, axis=1) * inv

    return jax.jit(pl.pallas_call(
        kernel,
        grid=(1,),
        in_specs=[pl.BlockSpec((N, HW, C), lambda i: (0, 0, 0))],
        out_specs=pl.BlockSpec((N, C), lambda i: (0, 0)),
        out_shape=jax.ShapeDtypeStruct((N, C), jnp.float32),
        compiler_params=pltpu.CompilerParams(
            dimension_semantics=("arbitrary",),
            vmem_limit_bytes=_VMEM_LIMIT,
        ),
    ))


# ---------------------------------------------------------------------------
# Kernel wrappers
# ---------------------------------------------------------------------------
def conv_matmul_stats(lhs, w):
    """lhs (M,K) bf16 @ w (K,N) bf16 -> y (Mp,Np) bf16 + per-channel (sum,sumsq)."""
    M, K = lhs.shape
    N = w.shape[1]
    tm, tn, tk, Mp, Np, Kp = _choose_tiles(M, K, N)
    key = ("bn", Mp, Kp, Np, tm, tk, tn)
    if key not in _MATMUL_CACHE:
        _MATMUL_CACHE[key] = _build_matmul(Mp, Kp, Np, tm, tk, tn,
                                           emit_stats=True, add_bias=False,
                                           out_dtype=jnp.bfloat16)
    y, part = _MATMUL_CACHE[key](_pad2(lhs, Mp, Kp), _pad2(w, Kp, Np))
    tot = jnp.sum(part, axis=0)            # tiny (Mt,2,Np)->(2,Np) glue reduce
    return y, tot, (Mp, Np, tm, tn)


def linear_bias(x, w, b):
    """Linear layer with fused bias add. Returns f32 (M, N)."""
    M, K = x.shape
    N = w.shape[1]
    tm, tn, tk, Mp, Np, Kp = _choose_tiles(M, K, N)
    key = ("fc", Mp, Kp, Np, tm, tk, tn)
    if key not in _MATMUL_CACHE:
        _MATMUL_CACHE[key] = _build_matmul(Mp, Kp, Np, tm, tk, tn,
                                           emit_stats=False, add_bias=True,
                                           out_dtype=jnp.float32)
    out = _MATMUL_CACHE[key](_pad2(x.astype(jnp.bfloat16), Mp, Kp),
                             _pad2(w, Kp, Np),
                             jnp.pad(b, (0, Np - N))[None, :])
    return out[:M, :N]


def _bn_scale_shift(tot, m_true, gamma, beta, Np):
    """Finalize global batch statistics into per-channel scale/shift (f32)."""
    mean = tot[0] / m_true
    var = jnp.maximum(tot[1] / m_true - mean * mean, 0.0)   # biased variance
    inv = jax.lax.rsqrt(var + _EPS)
    g = jnp.pad(gamma, (0, Np - gamma.shape[0]))
    b = jnp.pad(beta, (0, Np - beta.shape[0]))
    scale = g * inv
    shift = b - mean * scale
    return scale[None, :], shift[None, :]


def affine(y, scale, shift, residual, *, relu, Mp, Np, tm, tn):
    has_res = residual is not None
    key = (Mp, Np, tm, tn, has_res, relu)
    if key not in _AFFINE_CACHE:
        _AFFINE_CACHE[key] = _build_affine(Mp, Np, tm, tn, has_res, relu,
                                           out_dtype=jnp.bfloat16)
    args = (y, scale, shift) + ((residual,) if has_res else ())
    return _AFFINE_CACHE[key](*args)


# ---------------------------------------------------------------------------
# Plain-JAX glue: im2col and layer wrappers
# ---------------------------------------------------------------------------
def im2col(x, k, stride, pad):
    """x: (N,H,W,C) -> (N,Ho,Wo,k*k*C) patches, (dy,dx,cin) ordering, bf16."""
    N, H, W, C = x.shape
    if pad > 0:
        x = jnp.pad(x, ((0, 0), (pad, pad), (pad, pad), (0, 0)))
    Hp, Wp = H + 2 * pad, W + 2 * pad
    Ho = (Hp - k) // stride + 1
    Wo = (Wp - k) // stride + 1
    cols = [x[:, dy:dy + stride * (Ho - 1) + 1:stride,
              dx:dx + stride * (Wo - 1) + 1:stride, :]
            for dy in range(k) for dx in range(k)]
    return jnp.concatenate(cols, axis=-1), Ho, Wo


def conv_bn(x, w, gamma, beta, *, k, stride, pad, relu, residual=None):
    """Conv(bias=False) + training-mode BatchNorm (+residual)(+ReLU), NHWC bf16."""
    N, H, W, C = x.shape
    if k == 1:
        # 1x1 conv: no im2col needed at all (strided spatial slice + reshape).
        if stride > 1:
            x = x[:, ::stride, ::stride, :]
        Ho, Wo = x.shape[1], x.shape[2]
        lhs = x.reshape(N * Ho * Wo, C)
    else:
        # TODO(synk): fuse the k*k taps into the matmul grid (direct conv) to
        # avoid materializing im2col patches in HBM; for now patches are
        # emitted directly in bf16 to halve that traffic.
        patches, Ho, Wo = im2col(x, k, stride, pad)
        lhs = patches.reshape(N * Ho * Wo, k * k * C)

    M = N * Ho * Wo
    Cout = w.shape[1]
    y, tot, (Mp, Np, tm, tn) = conv_matmul_stats(lhs, w)
    scale, shift = _bn_scale_shift(tot, M, gamma, beta, Np)
    res = None
    if residual is not None:
        res = _pad2(residual.reshape(M, Cout), Mp, Np)
    out = affine(y, scale, shift, res, relu=relu, Mp=Mp, Np=Np, tm=tm, tn=tn)
    return out[:M, :Cout].reshape(N, Ho, Wo, Cout)


def maxpool(x, k=3, stride=2, pad=1):
    N, H, W, C = x.shape
    xp = x
    if pad > 0:
        xp = jnp.pad(x, ((0, 0), (pad, pad), (pad, pad), (0, 0)),
                     constant_values=-jnp.inf)
    Hp, Wp = H + 2 * pad, W + 2 * pad
    Ho = (Hp - k) // stride + 1
    Wo = (Wp - k) // stride + 1
    cols = [xp[:, dy:dy + stride * (Ho - 1) + 1:stride,
               dx:dx + stride * (Wo - 1) + 1:stride, :]
            for dy in range(k) for dx in range(k)]
    stacked = jnp.stack(cols, axis=3)                 # (N,Ho,Wo,k*k,C) — no transpose
    M = N * Ho * Wo
    flat = stacked.reshape(M, k * k, C)
    tm = min(512, _round_up(M, 8))
    Mp = _round_up(M, tm)
    if Mp != M:
        flat = jnp.pad(flat, ((0, Mp - M), (0, 0), (0, 0)))
    key = ("max", Mp, k * k, C, tm)
    if key not in _POOL_CACHE:
        _POOL_CACHE[key] = _build_maxpool(Mp, k * k, C, tm, flat.dtype)
    out = _POOL_CACHE[key](flat)
    return out[:M].reshape(N, Ho, Wo, C)


def global_avgpool(x):
    N, H, W, C = x.shape
    flat = x.reshape(N, H * W, C)
    key = ("avg", N, H * W, C)
    if key not in _POOL_CACHE:
        _POOL_CACHE[key] = _build_avgpool(N, H * W, C)
    return _POOL_CACHE[key](flat)                     # (N, C) f32


# ---------------------------------------------------------------------------
# Parameter init (deterministic, synthetic)
# ---------------------------------------------------------------------------
def _conv_w(key, k, cin, cout):
    fan_in = k * k * cin
    w = (jax.random.normal(key, (k * k * cin, cout), jnp.float32)
         * (2.0 / fan_in) ** 0.5)
    return w.astype(jnp.bfloat16)


def _bn_params(c):
    return jnp.ones((c,), jnp.float32), jnp.zeros((c,), jnp.float32)


class _KeyGen:
    def __init__(self, key):
        self.key = key
        self.i = 0

    def __call__(self):
        self.i += 1
        return jax.random.fold_in(self.key, self.i)


def init_bottleneck(kg, cin, cout, stride):
    cmid = cout // 4
    p = {"stride": stride}
    p["w1"] = _conv_w(kg(), 1, cin, cmid)
    p["g1"], p["b1"] = _bn_params(cmid)
    p["w2"] = _conv_w(kg(), 3, cmid, cmid)
    p["g2"], p["b2"] = _bn_params(cmid)
    p["w3"] = _conv_w(kg(), 1, cmid, cout)
    p["g3"], p["b3"] = _bn_params(cout)
    if stride != 1 or cin != cout:
        p["wd"] = _conv_w(kg(), 1, cin, cout)
        p["gd"], p["bd"] = _bn_params(cout)
    return p


def init_stage(kg, cin, cout, blocks, stride=1):
    layers = [init_bottleneck(kg, cin, cout, stride)]
    for _ in range(1, blocks):
        layers.append(init_bottleneck(kg, cout, cout, 1))
    return layers


def init_resnet152(key, in_channels=3, num_classes=1000):
    kg = _KeyGen(key)
    params = {}
    params["w_init"] = _conv_w(kg(), 7, in_channels, 64)
    params["g_init"], params["b_init"] = _bn_params(64)
    params["stage1"] = init_stage(kg, 64, 256, 3)
    params["stage2"] = init_stage(kg, 256, 512, 8, stride=2)
    params["stage3"] = init_stage(kg, 512, 1024, 36, stride=2)
    params["stage4"] = init_stage(kg, 1024, 2048, 3, stride=2)
    params["fc_w"] = (jax.random.normal(kg(), (2048, num_classes), jnp.float32)
                      * (1.0 / 2048) ** 0.5).astype(jnp.bfloat16)
    params["fc_b"] = jnp.zeros((num_classes,), jnp.float32)
    return params


# ---------------------------------------------------------------------------
# Forward pass
# ---------------------------------------------------------------------------
def bottleneck_forward(x, p):
    stride = p["stride"]
    identity = x
    out = conv_bn(x, p["w1"], p["g1"], p["b1"], k=1, stride=stride, pad=0,
                  relu=True)
    out = conv_bn(out, p["w2"], p["g2"], p["b2"], k=3, stride=1, pad=1,
                  relu=True)
    if "wd" in p:
        identity = conv_bn(x, p["wd"], p["gd"], p["bd"], k=1, stride=stride,
                           pad=0, relu=False)
    # conv3 + bn3 + residual add + relu, fused into the affine epilogue kernel.
    out = conv_bn(out, p["w3"], p["g3"], p["b3"], k=1, stride=1, pad=0,
                  relu=True, residual=identity)
    return out


def resnet152_forward(x_nhwc, params):
    x = x_nhwc.astype(jnp.bfloat16)
    x = conv_bn(x, params["w_init"], params["g_init"], params["b_init"],
                k=7, stride=2, pad=3, relu=True)
    x = maxpool(x, k=3, stride=2, pad=1)
    for stage in ("stage1", "stage2", "stage3", "stage4"):
        for block in params[stage]:
            x = bottleneck_forward(x, block)
    feat = global_avgpool(x)                       # (N, 2048) f32
    logits = linear_bias(feat, params["fc_w"], params["fc_b"])
    return logits


# ---------------------------------------------------------------------------
if __name__ == "__main__":
    root = jax.random.PRNGKey(0)
    k_in, k_par = jax.random.split(root)

    # Small spatial input, full ResNet152 channel architecture.
    x_nchw = jax.random.normal(k_in, (2, 3, 32, 32), jnp.float32)  # PyTorch NCHW
    x_nhwc = jnp.transpose(x_nchw, (0, 2, 3, 1))                   # kernel layout

    params = init_resnet152(k_par, in_channels=3, num_classes=1000)

    logits = resnet152_forward(x_nhwc, params)
    logits = jax.block_until_ready(logits)

    assert logits.shape == (2, 1000), logits.shape
    assert bool(jnp.all(jnp.isfinite(logits)))
    print("KERNEL_OK")
</pallas_src>

<mosaic_0001>
module attributes {stable_mosaic.version = 11 : i64} {
  func.func @kernel(%arg0: i32, %arg1: i32, %arg2: i32, %arg3: memref<256x256xbf16, #tpu.memory_space<vmem>>, %arg4: memref<256x64xbf16, #tpu.memory_space<vmem>>, %arg5: memref<256x64xbf16, #tpu.memory_space<vmem>>, %arg6: memref<1x2x64xf32, #tpu.memory_space<vmem>>, %arg7: memref<256x64xf32, #tpu.memory_space<vmem>>) attributes {dimension_semantics = [#tpu.dimension_semantics<parallel>, #tpu.dimension_semantics<parallel>, #tpu.dimension_semantics<arbitrary>], iteration_bounds = array<i64: 2, 1, 1>, scalar_prefetch = 0 : i64, scratch_operands = 1 : i64, tpu.core_type = #tpu.core_type<tc>, window_params = [{transform_indices = @transform_0, window_bounds = array<i64: 256, 256>}, {transform_indices = @transform_1, window_bounds = array<i64: 256, 64>}, {transform_indices = @transform_2, window_bounds = array<i64: 256, 64>}, {transform_indices = @transform_3, window_bounds = array<i64: 1, 2, 64>}]} {
    %c0_i32 = arith.constant 0 : i32
    %0 = arith.cmpi eq, %arg2, %c0_i32 : i32
    %1 = arith.extui %0 : i1 to i32
    %c0_i32_0 = arith.constant 0 : i32
    %2 = arith.cmpi ne, %1, %c0_i32_0 : i32
    scf.if %2 {
      %cst_10 = arith.constant 0.000000e+00 : f32
      %12 = vector.broadcast %cst_10 : f32 to vector<256x64xf32>
      %c0_11 = arith.constant 0 : index
      %c0_12 = arith.constant 0 : index
      %13 = vector.load %arg7[%c0_11, %c0_12] : memref<256x64xf32, #tpu.memory_space<vmem>>, vector<256x64xf32>
      tpu.vector_store %arg7[%c0_11, %c0_12], %12 {strides = array<i32>} : memref<256x64xf32, #tpu.memory_space<vmem>>, vector<256x64xf32>,
    } else {
    }
    %c0 = arith.constant 0 : index
    %c0_1 = arith.constant 0 : index
    %3 = vector.load %arg7[%c0, %c0_1] : memref<256x64xf32, #tpu.memory_space<vmem>>, vector<256x64xf32>
    %c0_2 = arith.constant 0 : index
    %c0_3 = arith.constant 0 : index
    %4 = vector.load %arg3[%c0_2, %c0_3] : memref<256x256xbf16, #tpu.memory_space<vmem>>, vector<256x256xbf16>
    %c0_4 = arith.constant 0 : index
    %c0_5 = arith.constant 0 : index
    %5 = vector.load %arg4[%c0_4, %c0_5] : memref<256x64xbf16, #tpu.memory_space<vmem>>, vector<256x64xbf16>
    %cst = arith.constant dense<0.000000e+00> : vector<256x64xf32>
    %6 = tpu.matmul %4, %5, %cst {dimension_numbers = #tpu.dot_dimension_numbers<[1], [0], [0], [1], [0, 0, 1, 1], [], []>} : vector<256x256xbf16>, vector<256x64xbf16>, vector<256x64xf32> -> vector<256x64xf32>
    %7 = arith.addf %3, %6 : vector<256x64xf32>
    %c0_6 = arith.constant 0 : index
    %c0_7 = arith.constant 0 : index
    %8 = vector.load %arg7[%c0_6, %c0_7] : memref<256x64xf32, #tpu.memory_space<vmem>>, vector<256x64xf32>
    tpu.vector_store %arg7[%c0_6, %c0_7], %7 {strides = array<i32>} : memref<256x64xf32, #tpu.memory_space<vmem>>, vector<256x64xf32>,
    %c0_i32_8 = arith.constant 0 : i32
    %9 = arith.cmpi eq, %arg2, %c0_i32_8 : i32
    %10 = arith.extui %9 : i1 to i32
    %c0_i32_9 = arith.constant 0 : i32
    %11 = arith.cmpi ne, %10, %c0_i32_9 : i32
    scf.if %11 {
      %c0_10 = arith.constant 0 : index
      %c0_11 = arith.constant 0 : index
      %12 = vector.load %arg7[%c0_10, %c0_11] : memref<256x64xf32, #tpu.memory_space<vmem>>, vector<256x64xf32>
      %13 = arith.truncf %12 : vector<256x64xf32> to vector<256x64xbf16>
      %c0_12 = arith.constant 0 : index
      %c0_13 = arith.constant 0 : index
      %14 = vector.load %arg5[%c0_12, %c0_13] : memref<256x64xbf16, #tpu.memory_space<vmem>>, vector<256x64xbf16>
      tpu.vector_store %arg5[%c0_12, %c0_13], %13 {strides = array<i32>} : memref<256x64xbf16, #tpu.memory_space<vmem>>, vector<256x64xbf16>,
      %cst_14 = arith.constant dense<0.000000e+00> : vector<64xf32>
      %15 = vector.multi_reduction <add>, %12, %cst_14 [0] : vector<256x64xf32> to vector<64xf32>
      %16 = vector.shape_cast %15 : vector<64xf32> to vector<1x64xf32>
      %c0_15 = arith.constant 0 : index
      %c0_16 = arith.constant 0 : index
      %c0_17 = arith.constant 0 : index
      %17 = vector.load %arg6[%c0_15, %c0_16, %c0_17] : memref<1x2x64xf32, #tpu.memory_space<vmem>>, vector<1x1x64xf32>
      %18 = vector.shape_cast %17 : vector<1x1x64xf32> to vector<1x64xf32>
      %19 = vector.shape_cast %16 : vector<1x64xf32> to vector<1x1x64xf32>
      tpu.vector_store %arg6[%c0_15, %c0_16, %c0_17], %19 {strides = array<i32>} : memref<1x2x64xf32, #tpu.memory_space<vmem>>, vector<1x1x64xf32>,
      %20 = arith.mulf %12, %12 : vector<256x64xf32>
      %cst_18 = arith.constant dense<0.000000e+00> : vector<64xf32>
      %21 = vector.multi_reduction <add>, %20, %cst_18 [0] : vector<256x64xf32> to vector<64xf32>
      %22 = vector.shape_cast %21 : vector<64xf32> to vector<1x64xf32>
      %c0_19 = arith.constant 0 : index
      %c1 = arith.constant 1 : index
      %c0_20 = arith.constant 0 : index
      %23 = vector.load %arg6[%c0_19, %c1, %c0_20] : memref<1x2x64xf32, #tpu.memory_space<vmem>>, vector<1x1x64xf32>
      %24 = vector.shape_cast %23 : vector<1x1x64xf32> to vector<1x64xf32>
      %25 = vector.shape_cast %22 : vector<1x64xf32> to vector<1x1x64xf32>
      tpu.vector_store %arg6[%c0_19, %c1, %c0_20], %25 {strides = array<i32>} : memref<1x2x64xf32, #tpu.memory_space<vmem>>, vector<1x1x64xf32>,
    } else {
    }
    return
  }
  func.func @transform_0(%arg0: i32, %arg1: i32, %arg2: i32) -> (i32, i32) {
    %c0_i32 = arith.constant 0 : i32
    return %arg0, %arg2 : i32, i32
  }
  func.func @transform_1(%arg0: i32, %arg1: i32, %arg2: i32) -> (i32, i32) {
    %c0_i32 = arith.constant 0 : i32
    return %arg2, %arg1 : i32, i32
  }
  func.func @transform_2(%arg0: i32, %arg1: i32, %arg2: i32) -> (i32, i32) {
    %c0_i32 = arith.constant 0 : i32
    return %arg0, %arg1 : i32, i32
  }
  func.func @transform_3(%arg0: i32, %arg1: i32, %arg2: i32) -> (i32, i32, i32) {
    %c0_i32 = arith.constant 0 : i32
    %c0_i32_0 = arith.constant 0 : i32
    return %arg0, %c0_i32, %arg1 : i32, i32, i32
  }
}

</mosaic_0001>

<bundles_post_ra>
// kernel: tpu_custom_call.1
= control target key start
LH: loop header
LB: loop body
LE: loop exit
PB: predicated region body
PF: predicated region fallthrough
CT: control target
= control target key end

     0   :  { %9 = vsyncpa [#allocation4], 0  ;;  %s2428_s0 = inlined_call_operand.hbm [shape: bf16[512,256], index: 0, kind: input, shape index: {}]   ;;  %s2429_s1 = inlined_call_operand.vmem [shape: bf16[256,64], index: 1, kind: input, shape index: {}]   ;;  %s2430_s2 = inlined_call_operand.vmem [shape: bf16[512,64], index: 2, kind: output, shape index: {0}]   ;;  %s2431_s3 = inlined_call_operand.hbm [shape: f32[2,2,64], index: 3, kind: output, shape index: {1}]  }
   0x1   :  { %11 = vsyncpa [#allocation4 + $0x1], 0 }
   0x2   :  { %12 = vsyncpa [#allocation5], 0 }
   0x3   :  { %14 = vsyncpa [#allocation5 + $0x1], 0  ;;  %s1821_s12 = smov 0   ;;  %s1823_s13 = smov 0  }
   0x4   :  { %s1825_s14 = smov 0   ;;  %s1827_s15 = smov 0  }
   0x5   :  { %s1829_s16 = smov 0   ;;  %s1831_s17 = smov 0  }
   0x6 LB: > { %s1343_s18 = sadd.s32 4294967295, %s1796_s17   ;;  %s1344_s19 = sadd.s32 4294967294, %s1796_s17   ;;  %s1796_s17 = sphi %s1831_s17, %s20_s17   ;;  %s1792_s16 = sphi %s1829_s16, %s2440_s16   ;;  %s1788_s15 = sphi %s1827_s15, %s2439_s15   ;;  %s1784_s14 = sphi %s1825_s14, %s2438_s14   ;;  %s1780_s13 = sphi %s1823_s13, %s2437_s13   ;;  %s1776_s12 = sphi %s1821_s12, %s2436_s12  }
   0x7   : > { %s39_s20 = sadd.s32 1, %s1792_s16  ;;  %s48_s21 = sadd.s32 1, %s1784_s14 }
   0x8   : > { %p41_p0 = scmp.ge.s32.totalorder %s39_s20, 2  ;;  %p55_p1 = scmp.ne.s32.totalorder %s1784_s14, %s1780_s13 }
   0x9   : > { %p56_p2 = scmp.eq.s32.totalorder %s1796_s17, 0  ;;  %p61_p3 = scmp.ne.s32.totalorder %s1780_s13, %s1776_s12 }
   0xa   : > { %s2442_s20 = smov (%p41_p0, %s39_s20), 0  ;;  %p62_p5 = scmp.eq.s32.totalorder %s1343_s18, 0 }
   0xb   : > { %p1862_p4 = por %p56_p2, %p55_p1  ;;  %s43_s23 = ssub.s32 %s1792_s16, %s2442_s20 }
   0xc   : > { %p143_p6 = scmp.eq.s32.totalorder %s1343_s18, 1  ;;  %p46_p7 = scmp.eq.s32.totalorder %s43_s23, 0 }
   0xd   : > { %p1868_p8 = por %p62_p5, %p61_p3  ;;  %p149_p10 = scmp.eq.s32.totalorder %s1344_s19, 1 }
   0xe   : > { %p1872_p9 = por %p143_p6, %p55_p1  ;;  %p1347_p12 = scmp.ge.s32.totalorder %s1796_s17, 2 }
   0xf   : > { %s1877_s26 = scalar_select %p46_p7, %s1784_s14, %s48_s21  }
  0x10   : > { %p1879_p11 = por %p149_p10, %p61_p3  ;;  %p1631_p13 = scmp.lt.s32.totalorder %s1796_s17, 2 }
  0x11   : > { %s181_s28 = sand.u32 1, %s1784_s14   ;;  %s1554_s30 = sshll.u32 %s1792_s16, 8 }
  0x12   : > { %s1348_s29 = sshll.u32 %s181_s28, 8  ;;  %s193_s6 = scalar_lea.hbm %s2428_s0, %s1554_s30 }
  0x13   : > { %s185_s7 = scalar_lea.vmem [#allocation3], %s1348_s29  ;;  %s194_s9 = sshll.u32 %s193_s6, 4  ;;  %s195_s9 = int_to_ptr.hbm [resolvable:$true] %s194_s9 }
  0x14   : > { %s196_s8 = sshll.u32 %s185_s7, 4  ;;  %p1624_p0 = pnand %p1631_p13, %p1862_p4  ;;  %s197_s8 = int_to_ptr.vmem [resolvable:$true] %s196_s8 }
  0x15   : > { %p1352_p1 = scmp.ge.s32.totalorder %s1796_s17, 1  ;;  %s182_s10 = scalar_lea.sflag [#allocation4], %s181_s28 }
  0x16   : > { %s1798_s11 = smov 128   ;;  %s1799_s18 = smov 8  }
  0x17   : > { %1626 = dma.hbm_to_vmem [thread:$0]  (!%p1624_p0), %s195_s9, 4096, %s197_s8, %s182_s10, %s1798_s11, %s1798_s11, %s1799_s18  }
  0x18   : > { %p204_p2 = scmp.lt.s32.totalorder %s1796_s17, 3 }
  0x1a   : > { %p205_p3 = pnand %p1352_p1, %p204_p2 }
  0x1b   : > { %s1895_s19 = sand.u32 (!%p205_p3), 1, %s1780_s13  }
  0x1c   : > { %208 = sbr.rel (%p205_p3) target bundleno = 377 (0x179), region = 28  ;;  %s1353_s21 = sshll.u32 (!%p205_p3), %s1895_s19, 8 }
  0x1d   : > { %s211_s23 = scalar_lea.sflag (!%p205_p3), [#allocation4], %s1895_s19  ;;  %s1899_s29 = scalar_lea.vmem (!%p205_p3), [#allocation3], %s1353_s21 }
  0x21   : > { %1767 = dma.done.wait (%p1868_p8), %s211_s23, 4096  }
  0x22   : > { %1769 = vsyncadd (%p1868_p8), %s211_s23, 4294963200  ;;  %v1594_v0 = vld [vmem:[%s2429_s1 + $0x38] sm:$0xff]  ;;  %v1593_v2 = vld [vmem:[%s2429_s1 + $0x30] sm:$0xff]  ;;  %vm278_vm0 = vcmask 523264   ;;  %vm973_vm1 = vcmask 519168   ;;  %s1354_s7 = sshll.u32 %s1895_s19, 1 }
  0x23   : > { %v1602_v1 = vld [vmem:[%s2429_s1 + $0x78] sm:$0xff]  ;;  %663 = vmatpush.bf16.msra.mxu0 %v1594_v0  ;;  %v1601_v3 = vld [vmem:[%s2429_s1 + $0x70] sm:$0xff]  ;;  %1603 = vmatpush.bf16.msra.mxu2 %v1594_v0  ;;  %v1592_v4 = vld [vmem:[%s2429_s1 + $0x28] sm:$0xff]  ;;  %s1550_s8 = sshll.u32 %s1788_s15, 1  ;;  %vm1075_vm2 = vcmask 516096   ;;  %s253_s11 = scalar_lea.vmem [#allocation6], %s1354_s7 }
  0x24   : > { %752 = vmatpush.bf16.msra.mxu1 %v1602_v1  ;;  %1611 = vmatpush.bf16.msra.mxu3 %v1602_v1  ;;  %v1600_v5 = vld [vmem:[%s2429_s1 + $0x68] sm:$0xff]  ;;  %v1591_v6 = vld [vmem:[%s2429_s1 + $0x20] sm:$0xff]  ;;  %v1590_v8 = vld [vmem:[%s2429_s1 + $0x18] sm:$0xff]  ;;  %s1203_s10 = scalar_lea.hbm %s2431_s3, %s1550_s8  ;;  %s1205_s18 = sshll.u32 %s253_s11, 4  ;;  %s1206_s18 = int_to_ptr.vmem [resolvable:$true] %s1205_s18 }
  0x25   : > { %v1599_v7 = vld [vmem:[%s2429_s1 + $0x60] sm:$0xff]  ;;  %v1598_v9 = vld [vmem:[%s2429_s1 + $0x58] sm:$0xff]  ;;  %v1589_v10 = vld [vmem:[%s2429_s1 + $0x10] sm:$0xff]  ;;  %s1207_s21 = sshll.u32 %s1203_s10, 4  ;;  %s1208_s21 = int_to_ptr.hbm [resolvable:$true] %s1207_s21 }
  0x26   : > { %v1597_v11 = vld [vmem:[%s2429_s1 + $0x50] sm:$0xff]  ;;  %v1588_v12 = vld [vmem:[%s2429_s1 + $0x8] sm:$0xff]  ;;  %v1587_v14 = vld [vmem:[%s2429_s1] sm:$0xff]  ;;  %s1728_s23 = sshra.s32 %s1208_s21, 4  ;;  %s1729_s23 = int_to_ptr.hbm [resolvable:$true] %s1728_s23 }
  0x27   : > { %664 = vmatpush.bf16.msra.mxu0 %v1593_v2  ;;  %1604 = vmatpush.bf16.msra.mxu2 %v1593_v2  ;;  %v1596_v13 = vld [vmem:[%s2429_s1 + $0x48] sm:$0xff]  ;;  %v1595_v15 = vld [vmem:[%s2429_s1 + $0x40] sm:$0xff]  ;;  %v1367_v28 = vld [vmem:[%s1899_s29 + $0x10] sm:$0xf]  ;;  %s1730_s22 = scalar_lea.hbm %s1729_s23, 2  ;;  %p1735_p8 = scmp.lt.s32.totalorder %s1729_s23, %s2431_s3 }
  0x28   : > { %753 = vmatpush.bf16.msra.mxu1 %v1601_v3  ;;  %1612 = vmatpush.bf16.msra.mxu3 %v1601_v3  ;;  %v1359_v16 = vld [vmem:[%s1899_s29] sm:$0xf]  ;;  %v1556_v17 = vld [vmem:[%s1899_s29 + $0x4] sm:$0xf0]  ;;  %v1555_v18 = vld [vmem:[%s1899_s29 + $0x4] sm:$0xf]  ;;  %p1731_p5 = scmp.ne.s32.totalorder %s1729_s23, %s1730_s22 }
  0x29   : > { %v1361_v19 = vld [vmem:[%s1899_s29 + $0x8] sm:$0xf0]  ;;  %v1423_v20 = vld [vmem:[%s1899_s29 + $0x80] sm:$0xf]  ;;  %v1572_v21 = vld [vmem:[%s1899_s29 + $0x84] sm:$0xf0]  ;;  %v1360_v24 = vor.u32 %v1556_v17, %v1359_v16 }
  0x2a   : > { %v1571_v22 = vld [vmem:[%s1899_s29 + $0x84] sm:$0xf]  ;;  %v1425_v23 = vld [vmem:[%s1899_s29 + $0x88] sm:$0xf0]  ;;  %v1364_v25 = vor.u32 %v1555_v18, %v1361_v19  ;;  %v1424_v26 = vor.u32 %v1572_v21, %v1423_v20  ;;  %v1558_v29 = vld [vmem:[%s1899_s29 + $0x14] sm:$0xf0]  ;;  %p1732_p6 = pnand %p1731_p5, %p1872_p9 }
  0x2b   : > { %665 = vmatpush.bf16.msra.mxu0 %v1592_v4  ;;  %1605 = vmatpush.bf16.msra.mxu2 %v1592_v4  ;;  %v1428_v27 = vor.u32 %v1571_v22, %v1425_v23  ;;  %v1557_v30 = vld [vmem:[%s1899_s29 + $0x14] sm:$0xf]  ;;  %v1369_v31 = vld [vmem:[%s1899_s29 + $0x18] sm:$0xf0]  ;;  %v1431_v32 = vld [vmem:[%s1899_s29 + $0x90] sm:$0xf]  ;;  %v1368_v36 = vor.u32 %v1558_v29, %v1367_v28 }
  0x2c   : > { %754 = vmatpush.bf16.msra.mxu1 %v1600_v5  ;;  %1613 = vmatpush.bf16.msra.mxu3 %v1600_v5  ;;  %v1574_v33 = vld [vmem:[%s1899_s29 + $0x94] sm:$0xf0]  ;;  %v1573_v34 = vld [vmem:[%s1899_s29 + $0x94] sm:$0xf]  ;;  %v1433_v35 = vld [vmem:[%s1899_s29 + $0x98] sm:$0xf0]  ;;  %v1372_v37 = vor.u32 %v1557_v30, %v1369_v31  ;;  %p1733_p7 = pneg %p1732_p6 }
  0x2d   : > { %v1432_v38 = vor.u32 %v1574_v33, %v1431_v32  ;;  %v1436_v39 = vor.u32 %v1573_v34, %v1433_v35  ;;  %v1375_v40 = vld [vmem:[%s1899_s29 + $0x20] sm:$0xf]  ;;  %v1560_v41 = vld [vmem:[%s1899_s29 + $0x24] sm:$0xf0]  ;;  %v1559_v42 = vld [vmem:[%s1899_s29 + $0x24] sm:$0xf] }
  0x2e   : > { %v1377_v43 = vld [vmem:[%s1899_s29 + $0x28] sm:$0xf0]  ;;  %v1439_v44 = vld [vmem:[%s1899_s29 + $0xa0] sm:$0xf]  ;;  %v1576_v45 = vld [vmem:[%s1899_s29 + $0xa4] sm:$0xf0]  ;;  %v1376_v48 = vor.u32 %v1560_v41, %v1375_v40 }
  0x2f   : > { %666 = vmatpush.bf16.msra.mxu0 %v1591_v6  ;;  %1606 = vmatpush.bf16.msra.mxu2 %v1591_v6  ;;  %v1575_v46 = vld [vmem:[%s1899_s29 + $0xa4] sm:$0xf]  ;;  %v1441_v47 = vld [vmem:[%s1899_s29 + $0xa8] sm:$0xf0]  ;;  %v1380_v49 = vor.u32 %v1559_v42, %v1377_v43  ;;  %v1440_v50 = vor.u32 %v1576_v45, %v1439_v44  ;;  %v1383_v52 = vld [vmem:[%s1899_s29 + $0x30] sm:$0xf] }
  0x30   : > { %755 = vmatpush.bf16.msra.mxu1 %v1599_v7  ;;  %1614 = vmatpush.bf16.msra.mxu3 %v1599_v7  ;;  %v1444_v51 = vor.u32 %v1575_v46, %v1441_v47  ;;  %v1562_v53 = vld [vmem:[%s1899_s29 + $0x34] sm:$0xf0]  ;;  %v1561_v54 = vld [vmem:[%s1899_s29 + $0x34] sm:$0xf]  ;;  %v1385_v55 = vld [vmem:[%s1899_s29 + $0x38] sm:$0xf0] }
  0x31   : > { %v1447_v56 = vld [vmem:[%s1899_s29 + $0xb0] sm:$0xf]  ;;  %v1578_v57 = vld [vmem:[%s1899_s29 + $0xb4] sm:$0xf0]  ;;  %v1577_v58 = vld [vmem:[%s1899_s29 + $0xb4] sm:$0xf]  ;;  %v1384_v60 = vor.u32 %v1562_v53, %v1383_v52  ;;  %v1388_v61 = vor.u32 %v1561_v54, %v1385_v55 }
  0x32   : > { %v1449_v59 = vld [vmem:[%s1899_s29 + $0xb8] sm:$0xf0]  ;;  %v1448_v62 = vor.u32 %v1578_v57, %v1447_v56  ;;  %v1391_v0 = vld [vmem:[%s1899_s29 + $0x40] sm:$0xf]  ;;  %v1564_v1 = vld [vmem:[%s1899_s29 + $0x44] sm:$0xf0] }
  0x33   : > { %667 = vmatpush.bf16.msra.mxu0 %v1590_v8  ;;  %1607 = vmatpush.bf16.msra.mxu2 %v1590_v8  ;;  %v1452_v63 = vor.u32 %v1577_v58, %v1449_v59  ;;  %v1563_v2 = vld [vmem:[%s1899_s29 + $0x44] sm:$0xf]  ;;  %v1393_v3 = vld [vmem:[%s1899_s29 + $0x48] sm:$0xf0]  ;;  %v1455_v4 = vld [vmem:[%s1899_s29 + $0xc0] sm:$0xf]  ;;  %v1392_v8 = vor.u32 %v1564_v1, %v1391_v0 }
  0x34   : > { %756 = vmatpush.bf16.msra.mxu1 %v1598_v9  ;;  %1615 = vmatpush.bf16.msra.mxu3 %v1598_v9  ;;  %v1580_v5 = vld [vmem:[%s1899_s29 + $0xc4] sm:$0xf0]  ;;  %v1579_v6 = vld [vmem:[%s1899_s29 + $0xc4] sm:$0xf]  ;;  %v1457_v7 = vld [vmem:[%s1899_s29 + $0xc8] sm:$0xf0]  ;;  %v1396_v9 = vor.u32 %v1563_v2, %v1393_v3 }
  0x35   : > { %v1463_v16 = vld [vmem:[%s1899_s29 + $0xd0] sm:$0xf]  ;;  %v1582_v17 = vld [vmem:[%s1899_s29 + $0xd4] sm:$0xf0]  ;;  %v1581_v18 = vld [vmem:[%s1899_s29 + $0xd4] sm:$0xf] }
  0x36   : > { %v1465_v19 = vld [vmem:[%s1899_s29 + $0xd8] sm:$0xf0]  ;;  %v1464_v22 = vor.u32 %v1582_v17, %v1463_v16  ;;  %v1800_v28 = vmov 0.0   ;;  %v1471_v29 = vld [vmem:[%s1899_s29 + $0xe0] sm:$0xf] }
  0x37   : > { %668 = vmatpush.bf16.msra.mxu0 %v1589_v10  ;;  %1608 = vmatpush.bf16.msra.mxu2 %v1589_v10  ;;  %v1456_v10 = vor.u32 %v1580_v5, %v1455_v4  ;;  %v1468_v23 = vor.u32 %v1581_v18, %v1465_v19  ;;  %279 = vst.msk [vmem:[#allocation2] sm:$0xff] %vm278_vm0, %v1800_v28  ;;  %v1584_v30 = vld [vmem:[%s1899_s29 + $0xe4] sm:$0xf0]  ;;  %v1583_v31 = vld [vmem:[%s1899_s29 + $0xe4] sm:$0xf] }
  0x38   : > { %757 = vmatpush.bf16.msra.mxu1 %v1597_v11  ;;  %1616 = vmatpush.bf16.msra.mxu3 %v1597_v11  ;;  %v1460_v11 = vor.u32 %v1579_v6, %v1457_v7  ;;  %280 = vst.msk [vmem:[#allocation2 + $0x8] sm:$0xff] %vm278_vm0, %v1800_v28  ;;  %v1473_v32 = vld [vmem:[%s1899_s29 + $0xe8] sm:$0xf0]  ;;  %v1472_v35 = vor.u32 %v1584_v30, %v1471_v29  ;;  %v1417_v40 = vld [vmem:[%s1899_s29 + $0x78] sm:$0xf0] }
  0x39   : > { %281 = vst.msk [vmem:[#allocation2 + $0x10] sm:$0xff] %vm278_vm0, %v1800_v28  ;;  %v1479_v41 = vld [vmem:[%s1899_s29 + $0xf0] sm:$0xf]  ;;  %v1586_v42 = vld [vmem:[%s1899_s29 + $0xf4] sm:$0xf0] }
  0x3a   : > { %282 = vst.msk [vmem:[#allocation2 + $0x18] sm:$0xff] %vm278_vm0, %v1800_v28  ;;  %v1585_v43 = vld [vmem:[%s1899_s29 + $0xf4] sm:$0xf]  ;;  %v1481_v44 = vld [vmem:[%s1899_s29 + $0xf8] sm:$0xf0]  ;;  %v1480_v47 = vor.u32 %v1586_v42, %v1479_v41 }
  0x3b   : > { %669 = vmatpush.bf16.msra.mxu0 %v1588_v12  ;;  %1609 = vmatpush.bf16.msra.mxu2 %v1588_v12  ;;  %v1399_v12 = vld [vmem:[%s1899_s29 + $0x50] sm:$0xf]  ;;  %283 = vst.msk [vmem:[#allocation2 + $0x20] sm:$0xff] %vm278_vm0, %v1800_v28 }
  0x3c   : > { %758 = vmatpush.bf16.msra.mxu1 %v1596_v13  ;;  %1617 = vmatpush.bf16.msra.mxu3 %v1596_v13  ;;  %v1566_v13 = vld [vmem:[%s1899_s29 + $0x54] sm:$0xf0]  ;;  %284 = vst.msk [vmem:[#allocation2 + $0x28] sm:$0xff] %vm278_vm0, %v1800_v28 }
  0x3d   : > { %v1400_v20 = vor.u32 %v1566_v13, %v1399_v12  ;;  %285 = vst.msk [vmem:[#allocation2 + $0x30] sm:$0xff] %vm278_vm0, %v1800_v28 }
  0x3e   : > { %286 = vst.msk [vmem:[#allocation2 + $0x38] sm:$0xff] %vm278_vm0, %v1800_v28 }
  0x3f   : > { %670 = vmatpush.bf16.msra.mxu0 %v1587_v14  ;;  %1610 = vmatpush.bf16.msra.mxu2 %v1587_v14  ;;  %v1565_v14 = vld [vmem:[%s1899_s29 + $0x54] sm:$0xf]  ;;  %287 = vst.msk [vmem:[#allocation2 + $0x40] sm:$0xff] %vm278_vm0, %v1800_v28  ;;  %v312_v58 = vld [vmem:[#allocation2 + $0x8] sm:$0xff] }
  0x40   : > { %759 = vmatpush.bf16.msra.mxu1 %v1595_v15  ;;  %1618 = vmatpush.bf16.msra.mxu3 %v1595_v15  ;;  %v1401_v15 = vld [vmem:[%s1899_s29 + $0x58] sm:$0xf0]  ;;  %288 = vst.msk [vmem:[#allocation2 + $0x48] sm:$0xff] %vm278_vm0, %v1800_v28  ;;  %v313_v6 = vld [vmem:[#allocation2 + $0x10] sm:$0xff] }
  0x41   : > { %v1404_v21 = vor.u32 %v1565_v14, %v1401_v15  ;;  %289 = vst.msk [vmem:[#allocation2 + $0x50] sm:$0xff] %vm278_vm0, %v1800_v28 }
  0x42   : > { %671 = vmatmul.bf16.vlgmr.msra.gmra.mxu0 %v1360_v24  ;;  %711 = vmatmul.bf16.vlgmr.msra.gmra.mxu2 %v1424_v26  ;;  %v1407_v24 = vld [vmem:[%s1899_s29 + $0x60] sm:$0xf]  ;;  %v1567_v26 = vld [vmem:[%s1899_s29 + $0x64] sm:$0xf]  ;;  %290 = vst.msk [vmem:[#allocation2 + $0x58] sm:$0xff] %vm278_vm0, %v1800_v28 }
  0x43   : > { %760 = vmatmul.bf16.vlgmr.msra.gmra.mxu1 %v1364_v25  ;;  %800 = vmatmul.bf16.vlgmr.msra.gmra.mxu3 %v1428_v27  ;;  %v1568_v25 = vld [vmem:[%s1899_s29 + $0x64] sm:$0xf0]  ;;  %v1409_v27 = vld [vmem:[%s1899_s29 + $0x68] sm:$0xf0]  ;;  %291 = vst.msk [vmem:[#allocation2 + $0x60] sm:$0xff] %vm278_vm0, %v1800_v28 }
  0x44   : > { %v1408_v33 = vor.u32 %v1568_v25, %v1407_v24  ;;  %v1412_v34 = vor.u32 %v1567_v26, %v1409_v27  ;;  %292 = vst.msk [vmem:[#allocation2 + $0x68] sm:$0xff] %vm278_vm0, %v1800_v28 }
  0x45   : > { %293 = vst.msk [vmem:[#allocation2 + $0x70] sm:$0xff] %vm278_vm0, %v1800_v28 }
  0x46   : > { %294 = vst.msk [vmem:[#allocation2 + $0x78] sm:$0xff] %vm278_vm0, %v1800_v28 }
  0x47   : > { %295 = vst.msk [vmem:[#allocation2 + $0x80] sm:$0xff] %vm278_vm0, %v1800_v28 }
  0x48   : > { %296 = vst.msk [vmem:[#allocation2 + $0x88] sm:$0xff] %vm278_vm0, %v1800_v28 }
  0x49   : > { %297 = vst.msk [vmem:[#allocation2 + $0x90] sm:$0xff] %vm278_vm0, %v1800_v28 }
  0x4a   : > { %298 = vst.msk [vmem:[#allocation2 + $0x98] sm:$0xff] %vm278_vm0, %v1800_v28 }
  0x4b   : > { %299 = vst.msk [vmem:[#allocation2 + $0xa0] sm:$0xff] %vm278_vm0, %v1800_v28 }
  0x4c   : > { %300 = vst.msk [vmem:[#allocation2 + $0xa8] sm:$0xff] %vm278_vm0, %v1800_v28 }
  0x4d   : > { %301 = vst.msk [vmem:[#allocation2 + $0xb0] sm:$0xff] %vm278_vm0, %v1800_v28 }
  0x4e   : > { %302 = vst.msk [vmem:[#allocation2 + $0xb8] sm:$0xff] %vm278_vm0, %v1800_v28  ;;  %v327_v55 = vld [vmem:[#allocation2 + $0x80] sm:$0xff] }
  0x4f   : > { %303 = vst.msk [vmem:[#allocation2 + $0xc0] sm:$0xff] %vm278_vm0, %v1800_v28  ;;  %v328_v3 = vld [vmem:[#allocation2 + $0x88] sm:$0xff] }
  0x50   : > { %304 = vst.msk [vmem:[#allocation2 + $0xc8] sm:$0xff] %vm278_vm0, %v1800_v28  ;;  %v329_v24 = vld [vmem:[#allocation2 + $0x90] sm:$0xff] }
  0x51   : > { %305 = vst.msk [vmem:[#allocation2 + $0xd0] sm:$0xff] %vm278_vm0, %v1800_v28 }
  0x52   : > { %676 = vmatmul.bf16.gmra.mxu0 %v1368_v36  ;;  %716 = vmatmul.bf16.gmra.mxu2 %v1432_v38  ;;  %v1476_v36 = vor.u32 %v1583_v31, %v1473_v32  ;;  %v1570_v38 = vld [vmem:[%s1899_s29 + $0x74] sm:$0xf0]  ;;  %306 = vst.msk [vmem:[#allocation2 + $0xd8] sm:$0xff] %vm278_vm0, %v1800_v28 }
  0x53   : > { %765 = vmatmul.bf16.gmra.mxu1 %v1372_v37  ;;  %805 = vmatmul.bf16.gmra.mxu3 %v1436_v39  ;;  %v1415_v37 = vld [vmem:[%s1899_s29 + $0x70] sm:$0xf]  ;;  %v1569_v39 = vld [vmem:[%s1899_s29 + $0x74] sm:$0xf]  ;;  %307 = vst.msk [vmem:[#allocation2 + $0xe0] sm:$0xff] %vm278_vm0, %v1800_v28  ;;  %s1355_s29 = sshll.u32 %s1788_s15, 5 }
  0x54   : > { %v1416_v45 = vor.u32 %v1570_v38, %v1415_v37  ;;  %v1420_v46 = vor.u32 %v1569_v39, %v1417_v40  ;;  %308 = vst.msk [vmem:[#allocation2 + $0xe8] sm:$0xff] %vm278_vm0, %v1800_v28  ;;  %p266_p4 = scmp.lt.s32.totalorder %s1355_s29, 63  ;;  %s1188_s15 = scalar_lea.sflag [#allocation5], %s1895_s19 }
  0x55   : > { %309 = vst.msk [vmem:[#allocation2 + $0xf0] sm:$0xff] %vm278_vm0, %v1800_v28 }
  0x56   : > { %310 = vst.msk [vmem:[#allocation2 + $0xf8] sm:$0xff] %vm278_vm0, %v1800_v28  ;;  %s2444_s29 = smov (!%p266_p4, %s1355_s29), 63  ;;  %v314_v28 = vld [vmem:[#allocation2 + $0x18] sm:$0xff] }
  0x57   : > { %s1356_s30 = sshll.u32 %s2444_s29, 2 }
  0x58   : > { %s2054_s6 = scalar_lea.vmem %s2430_s2, %s1356_s30  ;;  %s1734_s30 = scalar_lea.hbm %s2431_s3, 4 }
  0x59   : > { %p1736_p10 = scmp.lt.s32.totalorder %s1734_s30, %s1730_s22 }
  0x5b   : > { %p1737_p13 = por %p1736_p10, %p1735_p8 }
  0x5d   : > { %p1738_p0 = pnand %p1737_p13, %p1733_p7 }
  0x62   : > { %681 = vmatmul.bf16.gmra.mxu0 %v1376_v48  ;;  %721 = vmatmul.bf16.gmra.mxu2 %v1440_v50  ;;  %v1484_v48 = vor.u32 %v1585_v43, %v1481_v44  ;;  %v311_v50 = vld [vmem:[#allocation2] sm:$0xff]  ;;  %v330_v43 = vld [vmem:[#allocation2 + $0x98] sm:$0xff] }
  0x63   : > { %770 = vmatmul.bf16.gmra.mxu1 %v1380_v49  ;;  %810 = vmatmul.bf16.gmra.mxu3 %v1444_v51 }
  0x72   : > { %686 = vmatmul.bf16.gmra.mxu0 %v1384_v60  ;;  %726 = vmatmul.bf16.gmra.mxu2 %v1448_v62 }
  0x73   : > { %775 = vmatmul.bf16.gmra.mxu1 %v1388_v61  ;;  %815 = vmatmul.bf16.gmra.mxu3 %v1452_v63 }
  0x82   : > { %691 = vmatmul.bf16.gmra.mxu0 %v1392_v8  ;;  %731 = vmatmul.bf16.gmra.mxu2 %v1456_v10 }
  0x83   : > { %780 = vmatmul.bf16.gmra.mxu1 %v1396_v9  ;;  %820 = vmatmul.bf16.gmra.mxu3 %v1460_v11 }
  0x92   : > { %696 = vmatmul.bf16.gmra.mxu0 %v1400_v20  ;;  %736 = vmatmul.bf16.gmra.mxu2 %v1464_v22 }
  0x93   : > { %785 = vmatmul.bf16.gmra.mxu1 %v1404_v21  ;;  %825 = vmatmul.bf16.gmra.mxu3 %v1468_v23 }
  0xa2   : > { %701 = vmatmul.bf16.gmra.mxu0 %v1408_v33  ;;  %741 = vmatmul.bf16.gmra.mxu2 %v1472_v35 }
  0xa3   : > { %790 = vmatmul.bf16.gmra.mxu1 %v1412_v34  ;;  %830 = vmatmul.bf16.gmra.mxu3 %v1476_v36 }
  0xb2   : > { %706 = vmatmul.bf16.gmra.mxu0 %v1416_v45  ;;  %746 = vmatmul.bf16.gmra.mxu2 %v1480_v47  ;;  %v315_v47 = vld [vmem:[#allocation2 + $0x20] sm:$0xff] }
  0xb3   : > { %795 = vmatmul.bf16.gmra.mxu1 %v1420_v46  ;;  %835 = vmatmul.bf16.gmra.mxu3 %v1484_v48 }
  0xbf   : > { %v672_v49 = vpop.f32.mrf.mxu0 }
  0xc0   : > { %v761_v51 = vpop.f32.mrf.mxu1 }
  0xc1   : > { %v762_v52 = vadd.f32 %v761_v51, %v672_v49 }
  0xc3   : > { %v841_v53 = vadd.f32 %v762_v52, %v311_v50 }
  0xc5   : > { %874 = vst.msk [vmem:[#allocation2] sm:$0xff] %vm278_vm0, %v841_v53  ;;  %v712_v54 = vpop.f32.mrf.mxu2 }
  0xc6   : > { %v801_v56 = vpop.f32.mrf.mxu3 }
  0xc7   : > { %v674_v57 = vpop.f32.mrf.mxu0  ;;  %v802_v60 = vadd.f32 %v801_v56, %v712_v54 }
  0xc8   : > { %v763_v59 = vpop.f32.mrf.mxu1 }
  0xc9   : > { %v764_v61 = vadd.f32 %v763_v59, %v674_v57  ;;  %v857_v62 = vadd.f32 %v802_v60, %v327_v55 }
  0xcb   : > { %v842_v63 = vadd.f32 %v764_v61, %v312_v58  ;;  %890 = vst.msk [vmem:[#allocation2 + $0x80] sm:$0xff] %vm278_vm0, %v857_v62  ;;  %v331_v62 = vld [vmem:[#allocation2 + $0xa0] sm:$0xff] }
  0xcc   : > { %v909_v0 = vld [vmem:[#allocation2] sm:$0xff] }
  0xcd   : > { %v941_v1 = vpack.c.bf16 %v909_v0, %v909_v0  ;;  %875 = vst.msk [vmem:[#allocation2 + $0x8] sm:$0xff] %vm278_vm0, %v842_v63  ;;  %v714_v2 = vpop.f32.mrf.mxu2  ;;  %v1077_v11 = vmul.f32 %v909_v0, %v909_v0  ;;  %v1006_v16 = vsel %vm278_vm0, %v909_v0, 0.0 }
  0xce   : > { %v803_v4 = vpop.f32.mrf.mxu3 }
  0xcf   : > { %974 = vst.msk [vmem:[%s2054_s6] sm:$0xf] %vm973_vm1, %v941_v1  ;;  %v677_v5 = vpop.f32.mrf.mxu0  ;;  %v804_v8 = vadd.f32 %v803_v4, %v714_v2  ;;  %v1109_v21 = vsel %vm278_vm0, %v1077_v11, 0.0  ;;  %v316_v2 = vld [vmem:[#allocation2 + $0x28] sm:$0xff] }
  0xd0   : > { %v766_v7 = vpop.f32.mrf.mxu1 }
  0xd1   : > { %v767_v9 = vadd.f32 %v766_v7, %v677_v5  ;;  %v858_v10 = vadd.f32 %v804_v8, %v328_v3 }
  0xd2   : > { %v2060_v13 = vld [vmem:[#allocation2 + $0x80] sm:$0xff] }
  0xd3   : > { %v843_v12 = vadd.f32 %v767_v9, %v313_v6  ;;  %v957_v15 = vpack.c.bf16 %v2060_v13, %v2060_v13  ;;  %891 = vst.msk [vmem:[#allocation2 + $0x88] sm:$0xff] %vm278_vm0, %v858_v10 }
  0xd4   : > { %v910_v14 = vld [vmem:[#allocation2 + $0x8] sm:$0xff] }
  0xd5   : > { %v942_v17 = vpack.c.bf16 %v910_v14, %v910_v14  ;;  %v1007_v18 = vsel %vm278_vm0, %v910_v14, 0.0  ;;  %v1078_v19 = vmul.f32 %v910_v14, %v910_v14  ;;  %876 = vst.msk [vmem:[#allocation2 + $0x10] sm:$0xff] %vm278_vm0, %v843_v12  ;;  %v717_v23 = vpop.f32.mrf.mxu2 }
  0xd6   : > { %v1008_v20 = vadd.f32 %v1007_v18, %v1006_v16  ;;  %990 = vst.msk [vmem:[%s2054_s6 + $0x40] sm:$0xf] %vm973_vm1, %v957_v15  ;;  %v806_v25 = vpop.f32.mrf.mxu3  ;;  %v332_v18 = vld [vmem:[#allocation2 + $0xa8] sm:$0xff] }
  0xd7   : > { %975 = vst.msk [vmem:[%s2054_s6 + $0x4] sm:$0xf] %vm973_vm1, %v942_v17  ;;  %v1110_v22 = vsel %vm278_vm0, %v1078_v19, 0.0  ;;  %v679_v27 = vpop.f32.mrf.mxu0  ;;  %v807_v30 = vadd.f32 %v806_v25, %v717_v23 }
  0xd8   : > { %v1111_v26 = vadd.f32 %v1110_v22, %v1109_v21  ;;  %v768_v29 = vpop.f32.mrf.mxu1  ;;  %v317_v22 = vld [vmem:[#allocation2 + $0x30] sm:$0xff] }
  0xd9   : > { %v769_v31 = vadd.f32 %v768_v29, %v679_v27  ;;  %v859_v32 = vadd.f32 %v807_v30, %v329_v24 }
  0xda   : > { %v2074_v34 = vld [vmem:[#allocation2 + $0x88] sm:$0xff] }
  0xdb   : > { %v844_v33 = vadd.f32 %v769_v31, %v314_v28  ;;  %v958_v36 = vpack.c.bf16 %v2074_v34, %v2074_v34  ;;  %892 = vst.msk [vmem:[#allocation2 + $0x90] sm:$0xff] %vm278_vm0, %v859_v32 }
  0xdc   : > { %v911_v35 = vld [vmem:[#allocation2 + $0x10] sm:$0xff] }
  0xdd   : > { %v943_v37 = vpack.c.bf16 %v911_v35, %v911_v35  ;;  %v1009_v38 = vsel %vm278_vm0, %v911_v35, 0.0  ;;  %v1079_v39 = vmul.f32 %v911_v35, %v911_v35  ;;  %877 = vst.msk [vmem:[#allocation2 + $0x18] sm:$0xff] %vm278_vm0, %v844_v33  ;;  %v719_v42 = vpop.f32.mrf.mxu2  ;;  %v333_v33 = vld [vmem:[#allocation2 + $0xb0] sm:$0xff] }
  0xde   : > { %v1010_v40 = vadd.f32 %v1009_v38, %v1008_v20  ;;  %991 = vst.msk [vmem:[%s2054_s6 + $0x44] sm:$0xf] %vm973_vm1, %v958_v36  ;;  %v808_v44 = vpop.f32.mrf.mxu3 }
  0xdf   : > { %976 = vst.msk [vmem:[%s2054_s6 + $0x8] sm:$0xf] %vm973_vm1, %v943_v37  ;;  %v1112_v41 = vsel %vm278_vm0, %v1079_v39, 0.0  ;;  %v682_v46 = vpop.f32.mrf.mxu0  ;;  %v809_v49 = vadd.f32 %v808_v44, %v719_v42  ;;  %v318_v37 = vld [vmem:[#allocation2 + $0x38] sm:$0xff] }
  0xe0   : > { %v1113_v45 = vadd.f32 %v1112_v41, %v1111_v26  ;;  %v771_v48 = vpop.f32.mrf.mxu1 }
  0xe1   : > { %v772_v50 = vadd.f32 %v771_v48, %v682_v46  ;;  %v860_v51 = vadd.f32 %v809_v49, %v330_v43  ;;  %v334_v48 = vld [vmem:[#allocation2 + $0xb8] sm:$0xff] }
  0xe2   : > { %v2086_v53 = vld [vmem:[#allocation2 + $0x90] sm:$0xff] }
  0xe3   : > { %v845_v52 = vadd.f32 %v772_v50, %v315_v47  ;;  %v959_v55 = vpack.c.bf16 %v2086_v53, %v2086_v53  ;;  %893 = vst.msk [vmem:[#allocation2 + $0x98] sm:$0xff] %vm278_vm0, %v860_v51  ;;  %v319_v51 = vld [vmem:[#allocation2 + $0x40] sm:$0xff] }
  0xe4   : > { %v912_v54 = vld [vmem:[#allocation2 + $0x18] sm:$0xff] }
  0xe5   : > { %v944_v56 = vpack.c.bf16 %v912_v54, %v912_v54  ;;  %v1011_v57 = vsel %vm278_vm0, %v912_v54, 0.0  ;;  %v1080_v58 = vmul.f32 %v912_v54, %v912_v54  ;;  %878 = vst.msk [vmem:[#allocation2 + $0x20] sm:$0xff] %vm278_vm0, %v845_v52  ;;  %v722_v61 = vpop.f32.mrf.mxu2 }
  0xe6   : > { %v1012_v59 = vadd.f32 %v1011_v57, %v1010_v40  ;;  %992 = vst.msk [vmem:[%s2054_s6 + $0x48] sm:$0xf] %vm973_vm1, %v959_v55  ;;  %v811_v63 = vpop.f32.mrf.mxu3 }
  0xe7   : > { %977 = vst.msk [vmem:[%s2054_s6 + $0xc] sm:$0xf] %vm973_vm1, %v944_v56  ;;  %v1114_v60 = vsel %vm278_vm0, %v1080_v58, 0.0  ;;  %v684_v1 = vpop.f32.mrf.mxu0  ;;  %v812_v4 = vadd.f32 %v811_v63, %v722_v61  ;;  %v335_v63 = vld [vmem:[#allocation2 + $0xc0] sm:$0xff] }
  0xe8   : > { %v1115_v0 = vadd.f32 %v1114_v60, %v1113_v45  ;;  %v773_v3 = vpop.f32.mrf.mxu1 }
  0xe9   : > { %v774_v5 = vadd.f32 %v773_v3, %v684_v1  ;;  %v861_v6 = vadd.f32 %v812_v4, %v331_v62 }
  0xea   : > { %v2098_v8 = vld [vmem:[#allocation2 + $0x98] sm:$0xff] }
  0xeb   : > { %v846_v7 = vadd.f32 %v774_v5, %v316_v2  ;;  %v960_v10 = vpack.c.bf16 %v2098_v8, %v2098_v8  ;;  %894 = vst.msk [vmem:[#allocation2 + $0xa0] sm:$0xff] %vm278_vm0, %v861_v6  ;;  %v320_v2 = vld [vmem:[#allocation2 + $0x48] sm:$0xff] }
  0xec   : > { %v913_v9 = vld [vmem:[#allocation2 + $0x20] sm:$0xff] }
  0xed   : > { %v945_v11 = vpack.c.bf16 %v913_v9, %v913_v9  ;;  %v1013_v12 = vsel %vm278_vm0, %v913_v9, 0.0  ;;  %v1081_v14 = vmul.f32 %v913_v9, %v913_v9  ;;  %879 = vst.msk [vmem:[#allocation2 + $0x28] sm:$0xff] %vm278_vm0, %v846_v7  ;;  %v724_v17 = vpop.f32.mrf.mxu2 }
  0xee   : > { %v2105_v15 = vadd.f32 %v1013_v12, %v1012_v59  ;;  %993 = vst.msk [vmem:[%s2054_s6 + $0x4c] sm:$0xf] %vm973_vm1, %v960_v10  ;;  %v813_v19 = vpop.f32.mrf.mxu3 }
  0xef   : > { %978 = vst.msk [vmem:[%s2054_s6 + $0x10] sm:$0xf] %vm973_vm1, %v945_v11  ;;  %v1116_v16 = vsel %vm278_vm0, %v1081_v14, 0.0  ;;  %v687_v21 = vpop.f32.mrf.mxu0  ;;  %v814_v24 = vadd.f32 %v813_v19, %v724_v17  ;;  %v321_v19 = vld [vmem:[#allocation2 + $0x50] sm:$0xff] }
  0xf0   : > { %v2112_v20 = vadd.f32 %v1116_v16, %v1115_v0  ;;  %v776_v23 = vpop.f32.mrf.mxu1  ;;  %v336_v16 = vld [vmem:[#allocation2 + $0xc8] sm:$0xff] }
  0xf1   : > { %v777_v25 = vadd.f32 %v776_v23, %v687_v21  ;;  %v862_v26 = vadd.f32 %v814_v24, %v332_v18 }
  0xf2   : > { %v2114_v28 = vld [vmem:[#allocation2 + $0xa0] sm:$0xff] }
  0xf3   : > { %v847_v27 = vadd.f32 %v777_v25, %v317_v22  ;;  %v961_v30 = vpack.c.bf16 %v2114_v28, %v2114_v28  ;;  %895 = vst.msk [vmem:[#allocation2 + $0xa8] sm:$0xff] %vm278_vm0, %v862_v26 }
  0xf4   : > { %v2116_v29 = vld [vmem:[#allocation2 + $0x28] sm:$0xff] }
  0xf5   : > { %v946_v31 = vpack.c.bf16 %v2116_v29, %v2116_v29  ;;  %880 = vst.msk [vmem:[#allocation2 + $0x30] sm:$0xff] %vm278_vm0, %v847_v27  ;;  %v727_v32 = vpop.f32.mrf.mxu2 }
  0xf6   : > { %994 = vst.msk [vmem:[%s2054_s6 + $0x50] sm:$0xf] %vm973_vm1, %v961_v30  ;;  %v816_v35 = vpop.f32.mrf.mxu3 }
  0xf7   : > { %979 = vst.msk [vmem:[%s2054_s6 + $0x14] sm:$0xf] %vm973_vm1, %v946_v31  ;;  %v689_v36 = vpop.f32.mrf.mxu0  ;;  %v817_v39 = vadd.f32 %v816_v35, %v727_v32 }
  0xf8   : > { %v778_v38 = vpop.f32.mrf.mxu1 }
  0xf9   : > { %v779_v40 = vadd.f32 %v778_v38, %v689_v36  ;;  %v863_v41 = vadd.f32 %v817_v39, %v333_v33  ;;  %v337_v33 = vld [vmem:[#allocation2 + $0xd0] sm:$0xff] }
  0xfa   : > { %v2128_v43 = vld [vmem:[#allocation2 + $0xa8] sm:$0xff] }
  0xfb   : > { %v848_v42 = vadd.f32 %v779_v40, %v318_v37  ;;  %v962_v45 = vpack.c.bf16 %v2128_v43, %v2128_v43  ;;  %896 = vst.msk [vmem:[#allocation2 + $0xb0] sm:$0xff] %vm278_vm0, %v863_v41  ;;  %v322_v37 = vld [vmem:[#allocation2 + $0x58] sm:$0xff] }
  0xfc   : > { %v2130_v44 = vld [vmem:[#allocation2 + $0x30] sm:$0xff] }
  0xfd   : > { %v947_v46 = vpack.c.bf16 %v2130_v44, %v2130_v44  ;;  %881 = vst.msk [vmem:[#allocation2 + $0x38] sm:$0xff] %vm278_vm0, %v848_v42  ;;  %v729_v47 = vpop.f32.mrf.mxu2 }
  0xfe   : > { %995 = vst.msk [vmem:[%s2054_s6 + $0x54] sm:$0xf] %vm973_vm1, %v962_v45  ;;  %v818_v49 = vpop.f32.mrf.mxu3 }
  0xff   : > { %980 = vst.msk [vmem:[%s2054_s6 + $0x18] sm:$0xf] %vm973_vm1, %v947_v46  ;;  %v692_v50 = vpop.f32.mrf.mxu0  ;;  %v819_v54 = vadd.f32 %v818_v49, %v729_v47 }
 0x100   : > { %v781_v52 = vpop.f32.mrf.mxu1 }
 0x101   : > { %v782_v55 = vadd.f32 %v781_v52, %v692_v50  ;;  %v864_v56 = vadd.f32 %v819_v54, %v334_v48  ;;  %v338_v50 = vld [vmem:[#allocation2 + $0xd8] sm:$0xff]  ;;  %v323_v54 = vld [vmem:[#allocation2 + $0x60] sm:$0xff] }
 0x102   : > { %v2142_v58 = vld [vmem:[#allocation2 + $0xb0] sm:$0xff] }
 0x103   : > { %v849_v57 = vadd.f32 %v782_v55, %v319_v51  ;;  %v963_v60 = vpack.c.bf16 %v2142_v58, %v2142_v58  ;;  %897 = vst.msk [vmem:[#allocation2 + $0xb8] sm:$0xff] %vm278_vm0, %v864_v56 }
 0x104   : > { %v2144_v59 = vld [vmem:[#allocation2 + $0x38] sm:$0xff] }
 0x105   : > { %v948_v61 = vpack.c.bf16 %v2144_v59, %v2144_v59  ;;  %882 = vst.msk [vmem:[#allocation2 + $0x40] sm:$0xff] %vm278_vm0, %v849_v57  ;;  %v732_v62 = vpop.f32.mrf.mxu2 }
 0x106   : > { %996 = vst.msk [vmem:[%s2054_s6 + $0x58] sm:$0xf] %vm973_vm1, %v963_v60  ;;  %v821_v0 = vpop.f32.mrf.mxu3 }
 0x107   : > { %981 = vst.msk [vmem:[%s2054_s6 + $0x1c] sm:$0xf] %vm973_vm1, %v948_v61  ;;  %v694_v1 = vpop.f32.mrf.mxu0  ;;  %v822_v4 = vadd.f32 %v821_v0, %v732_v62 }
 0x108   : > { %v783_v3 = vpop.f32.mrf.mxu1 }
 0x109   : > { %v784_v5 = vadd.f32 %v783_v3, %v694_v1  ;;  %v865_v6 = vadd.f32 %v822_v4, %v335_v63  ;;  %v339_v3 = vld [vmem:[#allocation2 + $0xe0] sm:$0xff] }
 0x10a   : > { %v2156_v9 = vld [vmem:[#allocation2 + $0xb8] sm:$0xff] }
 0x10b   : > { %v850_v7 = vadd.f32 %v784_v5, %v320_v2  ;;  %898 = vst.msk [vmem:[#allocation2 + $0xc0] sm:$0xff] %vm278_vm0, %v865_v6  ;;  %v964_v11 = vpack.c.bf16 %v2156_v9, %v2156_v9  ;;  %v324_v6 = vld [vmem:[#allocation2 + $0x68] sm:$0xff] }
 0x10c   : > { %v2158_v10 = vld [vmem:[#allocation2 + $0x40] sm:$0xff] }
 0x10d   : > { %v949_v12 = vpack.c.bf16 %v2158_v10, %v2158_v10  ;;  %883 = vst.msk [vmem:[#allocation2 + $0x48] sm:$0xff] %vm278_vm0, %v850_v7  ;;  %v734_v14 = vpop.f32.mrf.mxu2 }
 0x10e   : > { %997 = vst.msk [vmem:[%s2054_s6 + $0x5c] sm:$0xf] %vm973_vm1, %v964_v11  ;;  %v823_v17 = vpop.f32.mrf.mxu3 }
 0x10f   : > { %982 = vst.msk [vmem:[%s2054_s6 + $0x20] sm:$0xf] %vm973_vm1, %v949_v12  ;;  %v697_v18 = vpop.f32.mrf.mxu0  ;;  %v824_v22 = vadd.f32 %v823_v17, %v734_v14 }
 0x110   : > { %v786_v21 = vpop.f32.mrf.mxu1 }
 0x111   : > { %v787_v23 = vadd.f32 %v786_v21, %v697_v18  ;;  %v866_v24 = vadd.f32 %v824_v22, %v336_v16  ;;  %v1082_v21 = vmul.f32 %v2116_v29, %v2116_v29 }
 0x112   : > { %v2170_v26 = vld [vmem:[#allocation2 + $0xc0] sm:$0xff] }
 0x113   : > { %v851_v25 = vadd.f32 %v787_v23, %v321_v19  ;;  %899 = vst.msk [vmem:[#allocation2 + $0xc8] sm:$0xff] %vm278_vm0, %v866_v24  ;;  %v965_v30 = vpack.c.bf16 %v2170_v26, %v2170_v26  ;;  %v1015_v23 = vsel %vm278_vm0, %v2116_v29, 0.0  ;;  %v1083_v24 = vmul.f32 %v2130_v44, %v2130_v44 }
 0x114   : > { %v2172_v27 = vld [vmem:[#allocation2 + $0x48] sm:$0xff]  ;;  %v1084_v29 = vmul.f32 %v2144_v59, %v2144_v59 }
 0x115   : > { %v950_v31 = vpack.c.bf16 %v2172_v27, %v2172_v27  ;;  %884 = vst.msk [vmem:[#allocation2 + $0x50] sm:$0xff] %vm278_vm0, %v851_v25  ;;  %v737_v32 = vpop.f32.mrf.mxu2 }
 0x116   : > { %998 = vst.msk [vmem:[%s2054_s6 + $0x60] sm:$0xf] %vm973_vm1, %v965_v30  ;;  %v826_v35 = vpop.f32.mrf.mxu3  ;;  %v340_v30 = vld [vmem:[#allocation2 + $0xe8] sm:$0xff] }
 0x117   : > { %983 = vst.msk [vmem:[%s2054_s6 + $0x24] sm:$0xf] %vm973_vm1, %v950_v31  ;;  %v699_v36 = vpop.f32.mrf.mxu0  ;;  %v827_v39 = vadd.f32 %v826_v35, %v737_v32 }
 0x118   : > { %v788_v38 = vpop.f32.mrf.mxu1 }
 0x119   : > { %v789_v40 = vadd.f32 %v788_v38, %v699_v36  ;;  %v867_v41 = vadd.f32 %v827_v39, %v337_v33  ;;  %v325_v33 = vld [vmem:[#allocation2 + $0x70] sm:$0xff]  ;;  %v1017_v38 = vsel %vm278_vm0, %v2130_v44, 0.0 }
 0x11a   : > { %v2184_v45 = vld [vmem:[#allocation2 + $0xc8] sm:$0xff] }
 0x11b   : > { %v852_v42 = vadd.f32 %v789_v40, %v322_v37  ;;  %900 = vst.msk [vmem:[#allocation2 + $0xd0] sm:$0xff] %vm278_vm0, %v867_v41  ;;  %v966_v47 = vpack.c.bf16 %v2184_v45, %v2184_v45  ;;  %v1118_v37 = vsel %vm278_vm0, %v1082_v21, 0.0  ;;  %v1016_v40 = vadd.f32 %v1015_v23, %v2105_v15 }
 0x11c   : > { %v2186_v46 = vld [vmem:[#allocation2 + $0x50] sm:$0xff]  ;;  %v1119_v44 = vadd.f32 %v1118_v37, %v2112_v20 }
 0x11d   : > { %v951_v48 = vpack.c.bf16 %v2186_v46, %v2186_v46  ;;  %885 = vst.msk [vmem:[#allocation2 + $0x58] sm:$0xff] %vm278_vm0, %v852_v42  ;;  %v739_v49 = vpop.f32.mrf.mxu2  ;;  %v1120_v42 = vsel %vm278_vm0, %v1083_v24, 0.0 }
 0x11e   : > { %999 = vst.msk [vmem:[%s2054_s6 + $0x64] sm:$0xf] %vm973_vm1, %v966_v47  ;;  %v828_v51 = vpop.f32.mrf.mxu3  ;;  %v1019_v47 = vsel %vm278_vm0, %v2144_v59, 0.0  ;;  %v1021_v59 = vsel %vm278_vm0, %v2158_v10, 0.0  ;;  %v1121_v20 = vadd.f32 %v1120_v42, %v1119_v44 }
 0x11f   : > { %984 = vst.msk [vmem:[%s2054_s6 + $0x28] sm:$0xf] %vm973_vm1, %v951_v48  ;;  %v702_v52 = vpop.f32.mrf.mxu0  ;;  %v829_v56 = vadd.f32 %v828_v51, %v739_v49  ;;  %v1085_v48 = vmul.f32 %v2158_v10, %v2158_v10  ;;  %v1018_v51 = vadd.f32 %v1017_v38, %v1016_v40 }
 0x120   : > { %v791_v55 = vpop.f32.mrf.mxu1 }
 0x121   : > { %v792_v57 = vadd.f32 %v791_v55, %v702_v52  ;;  %v868_v60 = vadd.f32 %v829_v56, %v338_v50  ;;  %v1086_v55 = vmul.f32 %v2172_v27, %v2172_v27 }
 0x122   : > { %v2198_v62 = vld [vmem:[#allocation2 + $0xd0] sm:$0xff] }
 0x123   : > { %v853_v61 = vadd.f32 %v792_v57, %v323_v54  ;;  %901 = vst.msk [vmem:[#allocation2 + $0xd8] sm:$0xff] %vm278_vm0, %v868_v60  ;;  %v967_v0 = vpack.c.bf16 %v2198_v62, %v2198_v62  ;;  %v1122_v54 = vsel %vm278_vm0, %v1084_v29, 0.0  ;;  %v1020_v57 = vadd.f32 %v1019_v47, %v1018_v51 }
 0x124   : > { %v2200_v63 = vld [vmem:[#allocation2 + $0x58] sm:$0xff]  ;;  %v1124_v60 = vsel %vm278_vm0, %v1085_v48, 0.0 }
 0x125   : > { %v952_v1 = vpack.c.bf16 %v2200_v63, %v2200_v63  ;;  %886 = vst.msk [vmem:[#allocation2 + $0x60] sm:$0xff] %vm278_vm0, %v853_v61  ;;  %v742_v2 = vpop.f32.mrf.mxu2  ;;  %v1023_v61 = vsel %vm278_vm0, %v2172_v27, 0.0  ;;  %v1088_v27 = vmul.f32 %v2200_v63, %v2200_v63  ;;  %v1027_v24 = vsel %vm278_vm0, %v2200_v63, 0.0  ;;  %v342_v48 = vld [vmem:[#allocation2 + $0xf8] sm:$0xff] }
 0x126   : > { %1000 = vst.msk [vmem:[%s2054_s6 + $0x68] sm:$0xf] %vm973_vm1, %v967_v0  ;;  %v831_v4 = vpop.f32.mrf.mxu3  ;;  %v1087_v0 = vmul.f32 %v2186_v46, %v2186_v46 }
 0x127   : > { %985 = vst.msk [vmem:[%s2054_s6 + $0x2c] sm:$0xf] %vm973_vm1, %v952_v1  ;;  %v704_v5 = vpop.f32.mrf.mxu0  ;;  %v832_v11 = vadd.f32 %v831_v4, %v742_v2  ;;  %v341_v1 = vld [vmem:[#allocation2 + $0xf0] sm:$0xff]  ;;  %v1022_v4 = vadd.f32 %v1021_v59, %v1020_v57 }
 0x128   : > { %v793_v7 = vpop.f32.mrf.mxu1  ;;  %v1128_v23 = vsel %vm278_vm0, %v1087_v0, 0.0 }
 0x129   : > { %v794_v12 = vadd.f32 %v793_v7, %v704_v5  ;;  %v869_v14 = vadd.f32 %v832_v11, %v339_v3  ;;  %v1123_v3 = vadd.f32 %v1122_v54, %v1121_v20  ;;  %v1024_v21 = vadd.f32 %v1023_v61, %v1022_v4 }
 0x12a   : > { %v2212_v17 = vld [vmem:[#allocation2 + $0xd8] sm:$0xff] }
 0x12b   : > { %v854_v16 = vadd.f32 %v794_v12, %v324_v6  ;;  %902 = vst.msk [vmem:[#allocation2 + $0xe0] sm:$0xff] %vm278_vm0, %v869_v14  ;;  %v968_v19 = vpack.c.bf16 %v2212_v17, %v2212_v17  ;;  %v326_v6 = vld [vmem:[#allocation2 + $0x78] sm:$0xff]  ;;  %v1126_v12 = vsel %vm278_vm0, %v1086_v55, 0.0  ;;  %v1025_v14 = vsel %vm278_vm0, %v2186_v46, 0.0 }
 0x12c   : > { %v2214_v18 = vld [vmem:[#allocation2 + $0x60] sm:$0xff] }
 0x12d   : > { %v953_v22 = vpack.c.bf16 %v2214_v18, %v2214_v18  ;;  %887 = vst.msk [vmem:[#allocation2 + $0x68] sm:$0xff] %vm278_vm0, %v854_v16  ;;  %v744_v25 = vpop.f32.mrf.mxu2  ;;  %v1029_v63 = vsel %vm278_vm0, %v2214_v18, 0.0 }
 0x12e   : > { %1001 = vst.msk [vmem:[%s2054_s6 + $0x6c] sm:$0xf] %vm973_vm1, %v968_v19  ;;  %v833_v31 = vpop.f32.mrf.mxu3  ;;  %v1125_v19 = vadd.f32 %v1124_v60, %v1123_v3 }
 0x12f   : > { %986 = vst.msk [vmem:[%s2054_s6 + $0x30] sm:$0xf] %vm973_vm1, %v953_v22  ;;  %v707_v32 = vpop.f32.mrf.mxu0  ;;  %v834_v36 = vadd.f32 %v833_v31, %v744_v25  ;;  %v1089_v25 = vmul.f32 %v2214_v18, %v2214_v18 }
 0x130   : > { %v796_v35 = vpop.f32.mrf.mxu1  ;;  %v1127_v46 = vadd.f32 %v1126_v12, %v1125_v19  ;;  %v1095_v19 = vmul.f32 %v2086_v53, %v2086_v53 }
 0x131   : > { %v797_v39 = vadd.f32 %v796_v35, %v707_v32  ;;  %v870_v41 = vadd.f32 %v834_v36, %v340_v30  ;;  %v1026_v32 = vadd.f32 %v1025_v14, %v1024_v21  ;;  %v1130_v36 = vsel %vm278_vm0, %v1088_v27, 0.0 }
 0x132   : > { %v2243_v50 = vld [vmem:[#allocation2 + $0xe0] sm:$0xff]  ;;  %v1129_v29 = vadd.f32 %v1128_v23, %v1127_v46  ;;  %v1132_v40 = vsel %vm278_vm0, %v1089_v25, 0.0  ;;  %v1096_v25 = vmul.f32 %v2098_v8, %v2098_v8 }
 0x133   : > { %v855_v49 = vadd.f32 %v797_v39, %v325_v33  ;;  %903 = vst.msk [vmem:[#allocation2 + $0xe8] sm:$0xff] %vm278_vm0, %v870_v41  ;;  %v969_v15 = vpack.c.bf16 %v2243_v50, %v2243_v50  ;;  %v1028_v39 = vadd.f32 %v1027_v24, %v1026_v32 }
 0x134   : > { %v922_v52 = vld [vmem:[#allocation2 + $0x68] sm:$0xff]  ;;  %v1131_v44 = vadd.f32 %v1130_v36, %v1129_v29  ;;  %v1045_v36 = vsel %vm278_vm0, %v2114_v28, 0.0 }
 0x135   : > { %v954_v56 = vpack.c.bf16 %v922_v52, %v922_v52  ;;  %888 = vst.msk [vmem:[#allocation2 + $0x70] sm:$0xff] %vm278_vm0, %v855_v49  ;;  %v747_v10 = vpop.f32.mrf.mxu2  ;;  %v1090_v37 = vmul.f32 %v922_v52, %v922_v52  ;;  %v1031_v41 = vsel %vm278_vm0, %v922_v52, 0.0  ;;  %v1030_v18 = vadd.f32 %v1029_v63, %v1028_v39 }
 0x136   : > { %1002 = vst.msk [vmem:[%s2054_s6 + $0x70] sm:$0xf] %vm973_vm1, %v969_v15  ;;  %v836_v2 = vpop.f32.mrf.mxu3  ;;  %v1133_v59 = vadd.f32 %v1132_v40, %v1131_v44 }
 0x137   : > { %987 = vst.msk [vmem:[%s2054_s6 + $0x34] sm:$0xf] %vm973_vm1, %v954_v56  ;;  %v709_v5 = vpop.f32.mrf.mxu0  ;;  %v837_v11 = vadd.f32 %v836_v2, %v747_v10  ;;  %v1134_v15 = vsel %vm278_vm0, %v1090_v37, 0.0  ;;  %v1032_v55 = vadd.f32 %v1031_v41, %v1030_v18  ;;  %v1093_v10 = vmul.f32 %v2060_v13, %v2060_v13 }
 0x138   : > { %v798_v7 = vpop.f32.mrf.mxu1  ;;  %v1135_v57 = vadd.f32 %v1134_v15, %v1133_v59  ;;  %v1146_v37 = vsel %vm278_vm0, %v1096_v25, 0.0  ;;  %v1099_v41 = vmul.f32 %v2142_v58, %v2142_v58  ;;  %v1101_v15 = vmul.f32 %v2170_v26, %v2170_v26 }
 0x139   : > { %v799_v16 = vadd.f32 %v798_v7, %v709_v5  ;;  %v871_v22 = vadd.f32 %v837_v11, %v341_v1  ;;  %v1094_v11 = vmul.f32 %v2074_v34, %v2074_v34  ;;  %v1140_v27 = vsel %vm278_vm0, %v1093_v10, 0.0 }
 0x13a   : > { %v2274_v31 = vld [vmem:[#allocation2 + $0xe8] sm:$0xff] }
 0x13b   : > { %v856_v30 = vadd.f32 %v799_v16, %v326_v6  ;;  %904 = vst.msk [vmem:[#allocation2 + $0xf0] sm:$0xff] %vm278_vm0, %v871_v22  ;;  %v970_v35 = vpack.c.bf16 %v2274_v31, %v2274_v31  ;;  %v1037_v6 = vsel %vm278_vm0, %v2060_v13, 0.0  ;;  %v1039_v16 = vsel %vm278_vm0, %v2074_v34, 0.0 }
 0x13c   : > { %v923_v33 = vld [vmem:[#allocation2 + $0x70] sm:$0xff]  ;;  %v1041_v22 = vsel %vm278_vm0, %v2086_v53, 0.0  ;;  %v1142_v24 = vsel %vm278_vm0, %v1094_v11, 0.0  ;;  %v1043_v34 = vsel %vm278_vm0, %v2098_v8, 0.0  ;;  %v1097_v53 = vmul.f32 %v2114_v28, %v2114_v28 }
 0x13d   : > { %v955_v38 = vpack.c.bf16 %v923_v33, %v923_v33  ;;  %889 = vst.msk [vmem:[#allocation2 + $0x78] sm:$0xff] %vm278_vm0, %v856_v30  ;;  %v1091_v42 = vmul.f32 %v923_v33, %v923_v33  ;;  %v749_v47 = vpop.f32.mrf.mxu2  ;;  %v1033_v54 = vsel %vm278_vm0, %v923_v33, 0.0  ;;  %v1144_v33 = vsel %vm278_vm0, %v1095_v19, 0.0 }
 0x13e   : > { %1003 = vst.msk [vmem:[%s2054_s6 + $0x74] sm:$0xf] %vm973_vm1, %v970_v35  ;;  %v838_v49 = vpop.f32.mrf.mxu3  ;;  %v1034_v60 = vadd.f32 %v1033_v54, %v1032_v55  ;;  %v1047_v8 = vsel %vm278_vm0, %v2128_v43, 0.0  ;;  %v1049_v28 = vsel %vm278_vm0, %v2142_v58, 0.0  ;;  %v1152_v54 = vsel %vm278_vm0, %v1099_v41, 0.0 }
 0x13f   : > { %988 = vst.msk [vmem:[%s2054_s6 + $0x38] sm:$0xf] %vm973_vm1, %v955_v38  ;;  %v839_v51 = vadd.f32 %v838_v49, %v749_v47  ;;  %v1136_v52 = vsel %vm278_vm0, %v1091_v42, 0.0  ;;  %v1098_v38 = vmul.f32 %v2128_v43, %v2128_v43  ;;  %v1148_v42 = vsel %vm278_vm0, %v1097_v53, 0.0 }
 0x140   : > { %v1137_v4 = vadd.f32 %v1136_v52, %v1135_v57  ;;  %v1100_v49 = vmul.f32 %v2156_v9, %v2156_v9  ;;  %v1051_v43 = vsel %vm278_vm0, %v2156_v9, 0.0  ;;  %v1053_v58 = vsel %vm278_vm0, %v2170_v26, 0.0 }
 0x141   : > { %v872_v56 = vadd.f32 %v839_v51, %v342_v48  ;;  %v1150_v44 = vsel %vm278_vm0, %v1098_v38, 0.0  ;;  %v1055_v9 = vsel %vm278_vm0, %v2184_v45, 0.0  ;;  %v1057_v26 = vsel %vm278_vm0, %v2198_v62, 0.0 }
 0x142   : > { %v2292_v20 = vld [vmem:[#allocation2 + $0xf0] sm:$0xff]  ;;  %v1154_v52 = vsel %vm278_vm0, %v1100_v49, 0.0 }
 0x143   : > { %905 = vst.msk [vmem:[#allocation2 + $0xf8] sm:$0xff] %vm278_vm0, %v872_v56  ;;  %v971_v0 = vpack.c.bf16 %v2292_v20, %v2292_v20  ;;  %v1102_v56 = vmul.f32 %v2184_v45, %v2184_v45  ;;  %v1059_v45 = vsel %vm278_vm0, %v2212_v17, 0.0 }
 0x144   : > { %v924_v61 = vld [vmem:[#allocation2 + $0x78] sm:$0xff] }
 0x145   : > { %v956_v1 = vpack.c.bf16 %v924_v61, %v924_v61  ;;  %v1035_v2 = vsel %vm278_vm0, %v924_v61, 0.0  ;;  %v1092_v3 = vmul.f32 %v924_v61, %v924_v61  ;;  %1004 = vst.msk [vmem:[%s2054_s6 + $0x78] sm:$0xf] %vm973_vm1, %v971_v0  ;;  %v1103_v61 = vmul.f32 %v2198_v62, %v2198_v62 }
 0x146   : > { %v1036_v5 = vadd.f32 %v1035_v2, %v1034_v60  ;;  %v1156_v0 = vsel %vm278_vm0, %v1101_v15, 0.0  ;;  %v1104_v2 = vmul.f32 %v2212_v17, %v2212_v17  ;;  %v1061_v62 = vsel %vm278_vm0, %v2243_v50, 0.0 }
 0x147   : > { %989 = vst.msk [vmem:[%s2054_s6 + $0x3c] sm:$0xf] %vm973_vm1, %v956_v1  ;;  %v1138_v7 = vsel %vm278_vm0, %v1092_v3, 0.0  ;;  %v1158_v3 = vsel %vm278_vm0, %v1102_v56, 0.0  ;;  %v1063_v17 = vsel %vm278_vm0, %v2274_v31, 0.0 }
 0x148   : > { %v1038_v12 = vadd.f32 %v1037_v6, %v1036_v5  ;;  %v1139_v14 = vadd.f32 %v1138_v7, %v1137_v4  ;;  %v1105_v6 = vmul.f32 %v2243_v50, %v2243_v50  ;;  %v1160_v7 = vsel %vm278_vm0, %v1103_v61, 0.0 }
 0x149   : > { %v1065_v50 = vsel %vm278_vm0, %v2292_v20, 0.0 }
 0x14a   : > { %v1040_v21 = vadd.f32 %v1039_v16, %v1038_v12  ;;  %v1141_v13 = vadd.f32 %v1140_v27, %v1139_v14  ;;  %v2316_v23 = vld [vmem:[#allocation2 + $0xf8] sm:$0xff]  ;;  %v1106_v14 = vmul.f32 %v2274_v31, %v2274_v31  ;;  %v1162_v27 = vsel %vm278_vm0, %v1104_v2, 0.0 }
 0x14b   : > { %v972_v30 = vpack.c.bf16 %v2316_v23, %v2316_v23  ;;  %v1108_v25 = vmul.f32 %v2316_v23, %v2316_v23  ;;  %v1067_v31 = vsel %vm278_vm0, %v2316_v23, 0.0 }
 0x14c   : > { %v1042_v46 = vadd.f32 %v1041_v22, %v1040_v21  ;;  %v1143_v32 = vadd.f32 %v1142_v24, %v1141_v13  ;;  %v1107_v21 = vmul.f32 %v2292_v20, %v2292_v20  ;;  %v1164_v13 = vsel %vm278_vm0, %v1105_v6, 0.0 }
 0x14d   : > { %1005 = vst.msk [vmem:[%s2054_s6 + $0x7c] sm:$0xf] %vm973_vm1, %v972_v30  ;;  %v1166_v30 = vsel %vm278_vm0, %v1106_v14, 0.0 }
 0x14e   : > { %v1044_v35 = vadd.f32 %v1043_v34, %v1042_v46  ;;  %v1145_v63 = vadd.f32 %v1144_v33, %v1143_v32  ;;  %v1168_v32 = vsel %vm278_vm0, %v1107_v21, 0.0 }
 0x150   : > { %v1046_v29 = vadd.f32 %v1045_v36, %v1044_v35  ;;  %v1147_v39 = vadd.f32 %v1146_v37, %v1145_v63  ;;  %v1170_v35 = vsel %vm278_vm0, %v1108_v25, 0.0 }
 0x152   : > { %v1048_v40 = vadd.f32 %v1047_v8, %v1046_v29  ;;  %v1149_v47 = vadd.f32 %v1148_v42, %v1147_v39 }
 0x154   : > { %v1050_v48 = vadd.f32 %v1049_v28, %v1048_v40  ;;  %v1151_v18 = vadd.f32 %v1150_v44, %v1149_v47 }
 0x156   : > { %v1052_v51 = vadd.f32 %v1051_v43, %v1050_v48  ;;  %v1153_v59 = vadd.f32 %v1152_v54, %v1151_v18 }
 0x158   : > { %v1054_v55 = vadd.f32 %v1053_v58, %v1052_v51  ;;  %v1155_v57 = vadd.f32 %v1154_v52, %v1153_v59 }
 0x15a   : > { %v1056_v60 = vadd.f32 %v1055_v9, %v1054_v55  ;;  %v1157_v10 = vadd.f32 %v1156_v0, %v1155_v57 }
 0x15c   : > { %v1058_v1 = vadd.f32 %v1057_v26, %v1056_v60  ;;  %v1159_v4 = vadd.f32 %v1158_v3, %v1157_v10 }
 0x15e   : > { %v1060_v5 = vadd.f32 %v1059_v45, %v1058_v1  ;;  %v1161_v11 = vadd.f32 %v1160_v7, %v1159_v4 }
 0x160   : > { %v1062_v12 = vadd.f32 %v1061_v62, %v1060_v5  ;;  %v1163_v16 = vadd.f32 %v1162_v27, %v1161_v11 }
 0x162   : > { %v1064_v19 = vadd.f32 %v1063_v17, %v1062_v12  ;;  %v1165_v22 = vadd.f32 %v1164_v13, %v1163_v16 }
 0x164   : > { %v1066_v24 = vadd.f32 %v1065_v50, %v1064_v19  ;;  %v1167_v46 = vadd.f32 %v1166_v30, %v1165_v22 }
 0x166   : > { %v1068_v34 = vadd.f32 %v1067_v31, %v1066_v24  ;;  %v1169_v33 = vadd.f32 %v1168_v32, %v1167_v46 }
 0x168   : > { %v1069_v53 = vrot.slane %v1068_v34, 4  ;;  %v1171_v20 = vadd.f32 %v1170_v35, %v1169_v33 }
 0x16a   : > { %v1070_v36 = vadd.f32 %v1069_v53, %v1068_v34  ;;  %v1172_v63 = vrot.slane %v1171_v20, 4 }
 0x16c   : > { %v1071_v37 = vrot.slane %v1070_v36, 2  ;;  %v1173_v38 = vadd.f32 %v1172_v63, %v1171_v20 }
 0x16e   : > { %v1072_v29 = vadd.f32 %v1071_v37, %v1070_v36  ;;  %v1174_v8 = vrot.slane %v1173_v38, 2 }
 0x170   : > { %v1073_v23 = vrot.slane %v1072_v29, 1  ;;  %v1175_v39 = vadd.f32 %v1174_v8, %v1173_v38 }
 0x172   : > { %v1074_v40 = vadd.f32 %v1073_v23, %v1072_v29  ;;  %v1176_v41 = vrot.slane %v1175_v39, 1 }
 0x174   : > { %1076 = vst.msk [vmem:[%s253_s11] sm:$0x1] %vm1075_vm2, %v1074_v40  ;;  %v1177_v42 = vadd.f32 %v1176_v41, %v1175_v39 }
 0x176   : > { %1178 = vst.msk [vmem:[%s253_s11 + $0x1] sm:$0x1] %vm1075_vm2, %v1177_v42 }
 0x177   : > { %1741 = shalt.err (!%p1738_p0)
}
 0x178   : > { %1621 = dma.vmem_to_hbm [thread:$0]  (%p1872_p9), %s1206_s18, 32, %s1208_s21, %s1188_s15  }
 0x179 PF: > { %s1230_s19 = sand.u32 1, %s1776_s12   ;;  %p1628_p1 = pnand %p1347_p12, %p1879_p11 }
 0x17a   : > { %s1231_s6 = scalar_lea.sflag [#allocation5], %s1230_s19 }
 0x17b   : > { %p1629_p2 = pneg %p1628_p1 }
 0x17d   : > { %1771 = dma.done.wait (%p1629_p2), %s1231_s6, 32  }
 0x17e   : > { %1773 = vsyncadd (%p1629_p2), %s1231_s6, 4294967264  ;;  %s20_s17 = sadd.s32 1, %s1796_s17   ;;  %s2436_s12 = smov %s1780_s13 }
 0x17f   : > { %p17_p3 = scmp.ge.s32.totalorder %s20_s17, 4   ;;  %s2437_s13 = smov %s1784_s14 }
 0x180   : > { %s2438_s14 = smov %s1877_s26  ;;  %s2439_s15 = smov %s1792_s16 }
 0x181   : > { %s2440_s16 = smov %s2442_s20  ;;  %19 = sbr.rel (!%p17_p3) target bundleno = 6 (0x6), region = 96 }
 0x186   :  { %1237 = vsyncpa [#allocation4], 1 }
 0x187   :  { %1239 = vsyncpa [#allocation4 + $0x1], 1 }
 0x188   :  { %1240 = vsyncpa [#allocation5], 1 }
 0x189   :  { %1242 = vsyncpa [#allocation5 + $0x1], 1 }

</bundles_post_ra>
